<compile_context>
chip_gen: v7x
topology: tpu7x:2x2x1
jax: 0.10.0
libtpu: 0.0.40
codegen_flags: <defaults>
</compile_context>

<pallas_src>
import jax
import jax.numpy as jnp
import numpy as np
from jax.experimental import pallas as pl
from jax.experimental.pallas import tpu as pltpu

# Spatial sizes (input / after conv1 / conv2 / conv3) and channel counts.
S0, S1, S2, S3 = 28, 14, 7, 4
C1, C2, C3 = 16, 16, 10
# Fused (W, C) lane widths of each activation.
N1, N2, N3 = S1 * C1, S2 * C2, S3 * C3        # 224, 112, 40
MAX_BT = 128                                   # max images per grid step


# ------------------------------ fused kernel -------------------------------

def _mnist_fused_kernel(x_ref, w1_ref, b1_ref, w2_ref, b2_ref, w3_ref, b3_ref,
                        pool_ref, o_ref, a1_ref, a2_ref):
    f32, bf16 = jnp.float32, jnp.bfloat16
    bt = x_ref.shape[1]

    # ---- conv1: 3x [(14*BT, 28) @ (28, 224)], one matmul per kernel row ----
    # x_ref is (30, BT, 28): H pre-padded by 1; parity-split the 30 rows so
    # each kh tap is a static leading-dim slice (rows 2*oh + kh).
    xp = x_ref[...].reshape(S1 + 1, 2, bt, S0)
    taps = (xp[0:S1, 0], xp[0:S1, 1], xp[1:S1 + 1, 0])
    acc = jnp.dot(taps[0].reshape(S1 * bt, S0), w1_ref[0],
                  preferred_element_type=f32)
    acc += jnp.dot(taps[1].reshape(S1 * bt, S0), w1_ref[1],
                   preferred_element_type=f32)
    acc += jnp.dot(taps[2].reshape(S1 * bt, S0), w1_ref[2],
                   preferred_element_type=f32)
    a1 = jnp.maximum(acc + b1_ref[...], 0.0).astype(bf16)     # (14*BT, 224)
    a1_ref[0:1] = jnp.zeros((1, bt, N1), bf16)    # top H-pad row (read below)
    a1_ref[1:1 + S1] = a1.reshape(S1, bt, N1)     # real rows 1..14

    # ---- conv2: 3x [(7*BT, 224) @ (224, 112)] ------------------------------
    a1p = a1_ref[...].reshape(S2 + 1, 2, bt, N1)
    taps = (a1p[0:S2, 0], a1p[0:S2, 1], a1p[1:S2 + 1, 0])
    acc = jnp.dot(taps[0].reshape(S2 * bt, N1), w2_ref[0],
                  preferred_element_type=f32)
    acc += jnp.dot(taps[1].reshape(S2 * bt, N1), w2_ref[1],
                   preferred_element_type=f32)
    acc += jnp.dot(taps[2].reshape(S2 * bt, N1), w2_ref[2],
                   preferred_element_type=f32)
    a2 = jnp.maximum(acc + b2_ref[...], 0.0).astype(bf16)     # (7*BT, 112)
    a2_ref[0:1] = jnp.zeros((1, bt, N2), bf16)          # top H-pad row
    a2_ref[1 + S2:2 + S2] = jnp.zeros((1, bt, N2), bf16)  # bottom H-pad row
    a2_ref[1:1 + S2] = a2.reshape(S2, bt, N2)

    # ---- conv3: 3x [(4*BT, 112) @ (112, 40)] -------------------------------
    a2p = a2_ref[...].reshape(S3 + 1, 2, bt, N2)
    taps = (a2p[0:S3, 0], a2p[0:S3, 1], a2p[1:S3 + 1, 0])
    acc = jnp.dot(taps[0].reshape(S3 * bt, N2), w3_ref[0],
                  preferred_element_type=f32)
    acc += jnp.dot(taps[1].reshape(S3 * bt, N2), w3_ref[1],
                   preferred_element_type=f32)
    acc += jnp.dot(taps[2].reshape(S3 * bt, N2), w3_ref[2],
                   preferred_element_type=f32)
    a3 = jnp.maximum(acc + b3_ref[...], 0.0)                  # (4*BT, 40) f32

    # ---- fused 4x4 average pool (== avg_pool2d(x, 4).view(-1, 10)) ---------
    srow = jnp.sum(a3.reshape(S3, bt, N3), axis=0)            # sum over rows
    o_ref[...] = jnp.dot(srow, pool_ref[...],                  # sum over cols/16
                         preferred_element_type=f32)


# ------------------------------- JAX wrapper --------------------------------

def _expand_conv_weight(w, s_in, s_out):
    """PyTorch conv weight (Cout, Cin, 3, 3) -> (3, s_in*Cin, s_out*Cout) bf16.

    out[kh, wi*Cin + ci, wo*Cout + co] = w[co, ci, kh, kw] if wi == 2*wo+kw-1,
    i.e. the stride-2 / pad-1 conv along W is folded into one (block-sparse)
    matmul per kernel row kh.
    """
    cout, cin = int(w.shape[0]), int(w.shape[1])
    sel = np.zeros((3, s_in, s_out), np.float32)
    for kw in range(3):
        for wo in range(s_out):
            wi = 2 * wo + kw - 1
            if 0 <= wi < s_in:
                sel[kw, wi, wo] = 1.0
    wk = jnp.einsum('kwz,oihk->hwizo', jnp.asarray(sel), w.astype(jnp.float32))
    return wk.reshape(3, s_in * cin, s_out * cout).astype(jnp.bfloat16)


def _round_up(n, m):
    return -(-n // m) * m


@jax.jit
def mnist_cnn_forward(xb, params):
    w1, b1, w2, b2, w3, b3 = params
    x = xb.reshape(-1, S0, S0)                 # == view(-1, 1, 28, 28), Cin=1
    B = x.shape[0]
    bt = min(MAX_BT, _round_up(max(B, 1), 16))  # batch tile (sublane dim)
    n_blk = -(-B // bt)
    Bp = n_blk * bt

    # Raw bf16 images, H-padded by 1 and batch-transposed: (30, Bp, 28).
    xh = jnp.pad(x, ((0, Bp - B), (1, 1), (0, 0)))
    xh = jnp.transpose(xh, (1, 0, 2)).astype(jnp.bfloat16)

    # Per-kernel-row block weights + (W, C)-fused biases / pooling matrix.
    w1k = _expand_conv_weight(w1, S0, S1)          # (3, 28, 224)
    w2k = _expand_conv_weight(w2, S1, S2)          # (3, 224, 112)
    w3k = _expand_conv_weight(w3, S2, S3)          # (3, 112, 40)
    b1r = jnp.tile(b1.astype(jnp.float32), S1).reshape(1, N1)
    b2r = jnp.tile(b2.astype(jnp.float32), S2).reshape(1, N2)
    b3r = jnp.tile(b3.astype(jnp.float32), S3).reshape(1, N3)
    pool = jnp.tile(jnp.eye(C3, dtype=jnp.float32), (S3, 1)) / float(S3 * S3)

    flops = Bp * 2 * (3 * S1 * S0 * N1 + 3 * S2 * N1 * N2 + 3 * S3 * N2 * N3
                      + N3 * C3)
    bytes_accessed = (xh.size * 2 + (w1k.size + w2k.size + w3k.size) * 2
                      + (b1r.size + b2r.size + b3r.size + pool.size) * 4
                      + Bp * C3 * 4)

    out = pl.pallas_call(
        _mnist_fused_kernel,
        out_shape=jax.ShapeDtypeStruct((Bp, C3), jnp.float32),
        grid_spec=pltpu.PrefetchScalarGridSpec(
            num_scalar_prefetch=0,
            grid=(n_blk,),
            in_specs=[
                pl.BlockSpec((2 * S1 + 2, bt, S0), lambda i: (0, i, 0)),
                pl.BlockSpec((3, S0, N1), lambda i: (0, 0, 0)),
                pl.BlockSpec((1, N1), lambda i: (0, 0)),
                pl.BlockSpec((3, N1, N2), lambda i: (0, 0, 0)),
                pl.BlockSpec((1, N2), lambda i: (0, 0)),
                pl.BlockSpec((3, N2, N3), lambda i: (0, 0, 0)),
                pl.BlockSpec((1, N3), lambda i: (0, 0)),
                pl.BlockSpec((N3, C3), lambda i: (0, 0)),
            ],
            out_specs=pl.BlockSpec((bt, C3), lambda i: (i, 0)),
            scratch_shapes=[
                pltpu.VMEM((2 * (S2 + 1), bt, N1), jnp.bfloat16),  # padded act1
                pltpu.VMEM((2 * (S3 + 1), bt, N2), jnp.bfloat16),  # padded act2
            ],
        ),
        compiler_params=pltpu.CompilerParams(
            dimension_semantics=("parallel",)),
        cost_estimate=pl.CostEstimate(flops=flops, transcendentals=0,
                                      bytes_accessed=bytes_accessed),
    )(xh, w1k, b1r, w2k, b2r, w3k, b3r, pool)
    return out[:B]


# --------------------------- params / reference -----------------------------

def init_params(key):
    ks = jax.random.split(key, 6)

    def conv_init(kw_, kb_, cout, cin, k):
        fan_in = cin * k * k
        bound = 1.0 / (fan_in ** 0.5)
        w = jax.random.uniform(kw_, (cout, cin, k, k), jnp.float32, -bound, bound)
        b = jax.random.uniform(kb_, (cout,), jnp.float32, -bound, bound)
        return w, b

    w1, b1 = conv_init(ks[0], ks[1], 16, 1, 3)
    w2, b2 = conv_init(ks[2], ks[3], 16, 16, 3)
    w3, b3 = conv_init(ks[4], ks[5], 10, 16, 3)
    return (w1, b1, w2, b2, w3, b3)


def _reference_forward(xb, params):
    # Pure-JAX (f32) reference of the PyTorch module for a sanity check.
    w1, b1, w2, b2, w3, b3 = params
    x = xb.reshape(-1, 1, 28, 28)

    def conv(x, w, b):
        y = jax.lax.conv_general_dilated(
            x, w, window_strides=(2, 2), padding=((1, 1), (1, 1)),
            dimension_numbers=("NCHW", "OIHW", "NCHW"))
        return jax.nn.relu(y + b.reshape(1, -1, 1, 1))

    x = conv(x, w1, b1)
    x = conv(x, w2, b2)
    x = conv(x, w3, b3)
    return jnp.mean(x, axis=(2, 3))          # avg_pool2d(4).view(-1, 10)


if __name__ == "__main__":
    key = jax.random.PRNGKey(0)
    k_x, k_p = jax.random.split(key)
    # 28x28 spatial is hard-coded by the module's .view(-1, 1, 28, 28)
    x = jax.random.normal(k_x, (2, 784), dtype=jnp.float32)
    params = init_params(k_p)

    out = mnist_cnn_forward(x, params)
    jax.block_until_ready(out)
    assert out.shape == (2, 10) and out.dtype == jnp.float32

    ref = _reference_forward(x, params)
    np.testing.assert_allclose(np.asarray(out), np.asarray(ref),
                               atol=5e-2, rtol=5e-2)
    # TODO(synk): the module's debug print() calls of layer shapes are not
    # reproduced (no device-side printing needed for the forward math).
    print("KERNEL_OK")
</pallas_src>

<mosaic_0001>
module attributes {stable_mosaic.version = 11 : i64} {
  func.func @_mnist_fused_kernel(%arg0: i32, %arg1: memref<30x16x28xbf16, #tpu.memory_space<vmem>>, %arg2: memref<3x28x224xbf16, #tpu.memory_space<vmem>>, %arg3: memref<1x224xf32, #tpu.memory_space<vmem>>, %arg4: memref<3x224x112xbf16, #tpu.memory_space<vmem>>, %arg5: memref<1x112xf32, #tpu.memory_space<vmem>>, %arg6: memref<3x112x40xbf16, #tpu.memory_space<vmem>>, %arg7: memref<1x40xf32, #tpu.memory_space<vmem>>, %arg8: memref<40x10xf32, #tpu.memory_space<vmem>>, %arg9: memref<16x10xf32, #tpu.memory_space<vmem>>, %arg10: memref<16x16x224xbf16, #tpu.memory_space<vmem>>, %arg11: memref<10x16x112xbf16, #tpu.memory_space<vmem>>) attributes {dimension_semantics = [#tpu.dimension_semantics<parallel>], iteration_bounds = array<i64: 1>, scalar_prefetch = 0 : i64, scratch_operands = 2 : i64, tpu.core_type = #tpu.core_type<tc>, window_params = [{transform_indices = @transform_0, window_bounds = array<i64: 30, 16, 28>}, {pipeline_mode = #tpu.pipeline_mode<synchronous>, transform_indices = @transform_1, window_bounds = array<i64: 3, 28, 224>}, {pipeline_mode = #tpu.pipeline_mode<synchronous>, transform_indices = @transform_2, window_bounds = array<i64: 1, 224>}, {pipeline_mode = #tpu.pipeline_mode<synchronous>, transform_indices = @transform_3, window_bounds = array<i64: 3, 224, 112>}, {pipeline_mode = #tpu.pipeline_mode<synchronous>, transform_indices = @transform_4, window_bounds = array<i64: 1, 112>}, {pipeline_mode = #tpu.pipeline_mode<synchronous>, transform_indices = @transform_5, window_bounds = array<i64: 3, 112, 40>}, {pipeline_mode = #tpu.pipeline_mode<synchronous>, transform_indices = @transform_6, window_bounds = array<i64: 1, 40>}, {pipeline_mode = #tpu.pipeline_mode<synchronous>, transform_indices = @transform_7, window_bounds = array<i64: 40, 10>}, {transform_indices = @transform_8, window_bounds = array<i64: 16, 10>}]} {
    %c0 = arith.constant 0 : index
    %c0_0 = arith.constant 0 : index
    %c0_1 = arith.constant 0 : index
    %0 = vector.load %arg1[%c0, %c0_0, %c0_1] : memref<30x16x28xbf16, #tpu.memory_space<vmem>>, vector<30x16x28xbf16>
    %1 = vector.shape_cast %0 : vector<30x16x28xbf16> to vector<15x2x16x28xbf16>
    %2 = vector.extract_strided_slice %1 {offsets = [0, 0, 0, 0], sizes = [14, 1, 16, 28], strides = [1, 1, 1, 1]} : vector<15x2x16x28xbf16> to vector<14x1x16x28xbf16>
    %3 = vector.shape_cast %2 : vector<14x1x16x28xbf16> to vector<14x16x28xbf16>
    %4 = vector.extract_strided_slice %1 {offsets = [0, 1, 0, 0], sizes = [14, 1, 16, 28], strides = [1, 1, 1, 1]} : vector<15x2x16x28xbf16> to vector<14x1x16x28xbf16>
    %5 = vector.shape_cast %4 : vector<14x1x16x28xbf16> to vector<14x16x28xbf16>
    %6 = vector.extract_strided_slice %1 {offsets = [1, 0, 0, 0], sizes = [14, 1, 16, 28], strides = [1, 1, 1, 1]} : vector<15x2x16x28xbf16> to vector<14x1x16x28xbf16>
    %7 = vector.shape_cast %6 : vector<14x1x16x28xbf16> to vector<14x16x28xbf16>
    %8 = vector.shape_cast %3 : vector<14x16x28xbf16> to vector<224x28xbf16>
    %c0_2 = arith.constant 0 : index
    %c0_3 = arith.constant 0 : index
    %c0_4 = arith.constant 0 : index
    %9 = vector.load %arg2[%c0_2, %c0_3, %c0_4] : memref<3x28x224xbf16, #tpu.memory_space<vmem>>, vector<1x28x224xbf16>
    %10 = vector.shape_cast %9 : vector<1x28x224xbf16> to vector<28x224xbf16>
    %cst = arith.constant dense<0.000000e+00> : vector<224x224xf32>
    %11 = tpu.matmul %8, %10, %cst {dimension_numbers = #tpu.dot_dimension_numbers<[1], [0], [0], [1], [0, 0, 1, 1], [], []>} : vector<224x28xbf16>, vector<28x224xbf16>, vector<224x224xf32> -> vector<224x224xf32>
    %12 = vector.shape_cast %5 : vector<14x16x28xbf16> to vector<224x28xbf16>
    %c1 = arith.constant 1 : index
    %c0_5 = arith.constant 0 : index
    %c0_6 = arith.constant 0 : index
    %13 = vector.load %arg2[%c1, %c0_5, %c0_6] : memref<3x28x224xbf16, #tpu.memory_space<vmem>>, vector<1x28x224xbf16>
    %14 = vector.shape_cast %13 : vector<1x28x224xbf16> to vector<28x224xbf16>
    %cst_7 = arith.constant dense<0.000000e+00> : vector<224x224xf32>
    %15 = tpu.matmul %12, %14, %cst_7 {dimension_numbers = #tpu.dot_dimension_numbers<[1], [0], [0], [1], [0, 0, 1, 1], [], []>} : vector<224x28xbf16>, vector<28x224xbf16>, vector<224x224xf32> -> vector<224x224xf32>
    %16 = arith.addf %11, %15 : vector<224x224xf32>
    %17 = vector.shape_cast %7 : vector<14x16x28xbf16> to vector<224x28xbf16>
    %c2 = arith.constant 2 : index
    %c0_8 = arith.constant 0 : index
    %c0_9 = arith.constant 0 : index
    %18 = vector.load %arg2[%c2, %c0_8, %c0_9] : memref<3x28x224xbf16, #tpu.memory_space<vmem>>, vector<1x28x224xbf16>
    %19 = vector.shape_cast %18 : vector<1x28x224xbf16> to vector<28x224xbf16>
    %cst_10 = arith.constant dense<0.000000e+00> : vector<224x224xf32>
    %20 = tpu.matmul %17, %19, %cst_10 {dimension_numbers = #tpu.dot_dimension_numbers<[1], [0], [0], [1], [0, 0, 1, 1], [], []>} : vector<224x28xbf16>, vector<28x224xbf16>, vector<224x224xf32> -> vector<224x224xf32>
    %21 = arith.addf %16, %20 : vector<224x224xf32>
    %c0_11 = arith.constant 0 : index
    %c0_12 = arith.constant 0 : index
    %22 = vector.load %arg3[%c0_11, %c0_12] : memref<1x224xf32, #tpu.memory_space<vmem>>, vector<1x224xf32>
    %23 = vector.broadcast %22 : vector<1x224xf32> to vector<224x224xf32>
    %24 = arith.addf %21, %23 : vector<224x224xf32>
    %cst_13 = arith.constant 0.000000e+00 : f32
    %25 = vector.broadcast %cst_13 : f32 to vector<224x224xf32>
    %26 = arith.maximumf %24, %25 : vector<224x224xf32>
    %27 = arith.truncf %26 : vector<224x224xf32> to vector<224x224xbf16>
    %cst_14 = arith.constant 0.000000e+00 : bf16
    %28 = vector.broadcast %cst_14 : bf16 to vector<1x16x224xbf16>
    %c0_15 = arith.constant 0 : index
    %c0_16 = arith.constant 0 : index
    %c0_17 = arith.constant 0 : index
    %29 = vector.load %arg10[%c0_15, %c0_16, %c0_17] : memref<16x16x224xbf16, #tpu.memory_space<vmem>>, vector<1x16x224xbf16>
    tpu.vector_store %arg10[%c0_15, %c0_16, %c0_17], %28 {strides = array<i32>} : memref<16x16x224xbf16, #tpu.memory_space<vmem>>, vector<1x16x224xbf16>,
    %30 = vector.shape_cast %27 : vector<224x224xbf16> to vector<14x16x224xbf16>
    %c1_18 = arith.constant 1 : index
    %c0_19 = arith.constant 0 : index
    %c0_20 = arith.constant 0 : index
    %31 = vector.load %arg10[%c1_18, %c0_19, %c0_20] : memref<16x16x224xbf16, #tpu.memory_space<vmem>>, vector<14x16x224xbf16>
    tpu.vector_store %arg10[%c1_18, %c0_19, %c0_20], %30 {strides = array<i32>} : memref<16x16x224xbf16, #tpu.memory_space<vmem>>, vector<14x16x224xbf16>,
    %c0_21 = arith.constant 0 : index
    %c0_22 = arith.constant 0 : index
    %c0_23 = arith.constant 0 : index
    %32 = vector.load %arg10[%c0_21, %c0_22, %c0_23] : memref<16x16x224xbf16, #tpu.memory_space<vmem>>, vector<16x16x224xbf16>
    %33 = vector.shape_cast %32 : vector<16x16x224xbf16> to vector<8x2x16x224xbf16>
    %34 = vector.extract_strided_slice %33 {offsets = [0, 0, 0, 0], sizes = [7, 1, 16, 224], strides = [1, 1, 1, 1]} : vector<8x2x16x224xbf16> to vector<7x1x16x224xbf16>
    %35 = vector.shape_cast %34 : vector<7x1x16x224xbf16> to vector<7x16x224xbf16>
    %36 = vector.extract_strided_slice %33 {offsets = [0, 1, 0, 0], sizes = [7, 1, 16, 224], strides = [1, 1, 1, 1]} : vector<8x2x16x224xbf16> to vector<7x1x16x224xbf16>
    %37 = vector.shape_cast %36 : vector<7x1x16x224xbf16> to vector<7x16x224xbf16>
    %38 = vector.extract_strided_slice %33 {offsets = [1, 0, 0, 0], sizes = [7, 1, 16, 224], strides = [1, 1, 1, 1]} : vector<8x2x16x224xbf16> to vector<7x1x16x224xbf16>
    %39 = vector.shape_cast %38 : vector<7x1x16x224xbf16> to vector<7x16x224xbf16>
    %40 = vector.shape_cast %35 : vector<7x16x224xbf16> to vector<112x224xbf16>
    %c0_24 = arith.constant 0 : index
    %c0_25 = arith.constant 0 : index
    %c0_26 = arith.constant 0 : index
    %41 = vector.load %arg4[%c0_24, %c0_25, %c0_26] : memref<3x224x112xbf16, #tpu.memory_space<vmem>>, vector<1x224x112xbf16>
    %42 = vector.shape_cast %41 : vector<1x224x112xbf16> to vector<224x112xbf16>
    %cst_27 = arith.constant dense<0.000000e+00> : vector<112x112xf32>
    %43 = tpu.matmul %40, %42, %cst_27 {dimension_numbers = #tpu.dot_dimension_numbers<[1], [0], [0], [1], [0, 0, 1, 1], [], []>} : vector<112x224xbf16>, vector<224x112xbf16>, vector<112x112xf32> -> vector<112x112xf32>
    %44 = vector.shape_cast %37 : vector<7x16x224xbf16> to vector<112x224xbf16>
    %c1_28 = arith.constant 1 : index
    %c0_29 = arith.constant 0 : index
    %c0_30 = arith.constant 0 : index
    %45 = vector.load %arg4[%c1_28, %c0_29, %c0_30] : memref<3x224x112xbf16, #tpu.memory_space<vmem>>, vector<1x224x112xbf16>
    %46 = vector.shape_cast %45 : vector<1x224x112xbf16> to vector<224x112xbf16>
    %cst_31 = arith.constant dense<0.000000e+00> : vector<112x112xf32>
    %47 = tpu.matmul %44, %46, %cst_31 {dimension_numbers = #tpu.dot_dimension_numbers<[1], [0], [0], [1], [0, 0, 1, 1], [], []>} : vector<112x224xbf16>, vector<224x112xbf16>, vector<112x112xf32> -> vector<112x112xf32>
    %48 = arith.addf %43, %47 : vector<112x112xf32>
    %49 = vector.shape_cast %39 : vector<7x16x224xbf16> to vector<112x224xbf16>
    %c2_32 = arith.constant 2 : index
    %c0_33 = arith.constant 0 : index
    %c0_34 = arith.constant 0 : index
    %50 = vector.load %arg4[%c2_32, %c0_33, %c0_34] : memref<3x224x112xbf16, #tpu.memory_space<vmem>>, vector<1x224x112xbf16>
    %51 = vector.shape_cast %50 : vector<1x224x112xbf16> to vector<224x112xbf16>
    %cst_35 = arith.constant dense<0.000000e+00> : vector<112x112xf32>
    %52 = tpu.matmul %49, %51, %cst_35 {dimension_numbers = #tpu.dot_dimension_numbers<[1], [0], [0], [1], [0, 0, 1, 1], [], []>} : vector<112x224xbf16>, vector<224x112xbf16>, vector<112x112xf32> -> vector<112x112xf32>
    %53 = arith.addf %48, %52 : vector<112x112xf32>
    %c0_36 = arith.constant 0 : index
    %c0_37 = arith.constant 0 : index
    %54 = vector.load %arg5[%c0_36, %c0_37] : memref<1x112xf32, #tpu.memory_space<vmem>>, vector<1x112xf32>
    %55 = vector.broadcast %54 : vector<1x112xf32> to vector<112x112xf32>
    %56 = arith.addf %53, %55 : vector<112x112xf32>
    %cst_38 = arith.constant 0.000000e+00 : f32
    %57 = vector.broadcast %cst_38 : f32 to vector<112x112xf32>
    %58 = arith.maximumf %56, %57 : vector<112x112xf32>
    %59 = arith.truncf %58 : vector<112x112xf32> to vector<112x112xbf16>
    %cst_39 = arith.constant 0.000000e+00 : bf16
    %60 = vector.broadcast %cst_39 : bf16 to vector<1x16x112xbf16>
    %c0_40 = arith.constant 0 : index
    %c0_41 = arith.constant 0 : index
    %c0_42 = arith.constant 0 : index
    %61 = vector.load %arg11[%c0_40, %c0_41, %c0_42] : memref<10x16x112xbf16, #tpu.memory_space<vmem>>, vector<1x16x112xbf16>
    tpu.vector_store %arg11[%c0_40, %c0_41, %c0_42], %60 {strides = array<i32>} : memref<10x16x112xbf16, #tpu.memory_space<vmem>>, vector<1x16x112xbf16>,
    %cst_43 = arith.constant 0.000000e+00 : bf16
    %62 = vector.broadcast %cst_43 : bf16 to vector<1x16x112xbf16>
    %c8 = arith.constant 8 : index
    %c0_44 = arith.constant 0 : index
    %c0_45 = arith.constant 0 : index
    %63 = vector.load %arg11[%c8, %c0_44, %c0_45] : memref<10x16x112xbf16, #tpu.memory_space<vmem>>, vector<1x16x112xbf16>
    tpu.vector_store %arg11[%c8, %c0_44, %c0_45], %62 {strides = array<i32>} : memref<10x16x112xbf16, #tpu.memory_space<vmem>>, vector<1x16x112xbf16>,
    %64 = vector.shape_cast %59 : vector<112x112xbf16> to vector<7x16x112xbf16>
    %c1_46 = arith.constant 1 : index
    %c0_47 = arith.constant 0 : index
    %c0_48 = arith.constant 0 : index
    %65 = vector.load %arg11[%c1_46, %c0_47, %c0_48] : memref<10x16x112xbf16, #tpu.memory_space<vmem>>, vector<7x16x112xbf16>
    tpu.vector_store %arg11[%c1_46, %c0_47, %c0_48], %64 {strides = array<i32>} : memref<10x16x112xbf16, #tpu.memory_space<vmem>>, vector<7x16x112xbf16>,
    %c0_49 = arith.constant 0 : index
    %c0_50 = arith.constant 0 : index
    %c0_51 = arith.constant 0 : index
    %66 = vector.load %arg11[%c0_49, %c0_50, %c0_51] : memref<10x16x112xbf16, #tpu.memory_space<vmem>>, vector<10x16x112xbf16>
    %67 = vector.shape_cast %66 : vector<10x16x112xbf16> to vector<5x2x16x112xbf16>
    %68 = vector.extract_strided_slice %67 {offsets = [0, 0, 0, 0], sizes = [4, 1, 16, 112], strides = [1, 1, 1, 1]} : vector<5x2x16x112xbf16> to vector<4x1x16x112xbf16>
    %69 = vector.shape_cast %68 : vector<4x1x16x112xbf16> to vector<4x16x112xbf16>
    %70 = vector.extract_strided_slice %67 {offsets = [0, 1, 0, 0], sizes = [4, 1, 16, 112], strides = [1, 1, 1, 1]} : vector<5x2x16x112xbf16> to vector<4x1x16x112xbf16>
    %71 = vector.shape_cast %70 : vector<4x1x16x112xbf16> to vector<4x16x112xbf16>
    %72 = vector.extract_strided_slice %67 {offsets = [1, 0, 0, 0], sizes = [4, 1, 16, 112], strides = [1, 1, 1, 1]} : vector<5x2x16x112xbf16> to vector<4x1x16x112xbf16>
    %73 = vector.shape_cast %72 : vector<4x1x16x112xbf16> to vector<4x16x112xbf16>
    %74 = vector.shape_cast %69 : vector<4x16x112xbf16> to vector<64x112xbf16>
    %c0_52 = arith.constant 0 : index
    %c0_53 = arith.constant 0 : index
    %c0_54 = arith.constant 0 : index
    %75 = vector.load %arg6[%c0_52, %c0_53, %c0_54] : memref<3x112x40xbf16, #tpu.memory_space<vmem>>, vector<1x112x40xbf16>
    %76 = vector.shape_cast %75 : vector<1x112x40xbf16> to vector<112x40xbf16>
    %cst_55 = arith.constant dense<0.000000e+00> : vector<64x40xf32>
    %77 = tpu.matmul %74, %76, %cst_55 {dimension_numbers = #tpu.dot_dimension_numbers<[1], [0], [0], [1], [0, 0, 1, 1], [], []>} : vector<64x112xbf16>, vector<112x40xbf16>, vector<64x40xf32> -> vector<64x40xf32>
    %78 = vector.shape_cast %71 : vector<4x16x112xbf16> to vector<64x112xbf16>
    %c1_56 = arith.constant 1 : index
    %c0_57 = arith.constant 0 : index
    %c0_58 = arith.constant 0 : index
    %79 = vector.load %arg6[%c1_56, %c0_57, %c0_58] : memref<3x112x40xbf16, #tpu.memory_space<vmem>>, vector<1x112x40xbf16>
    %80 = vector.shape_cast %79 : vector<1x112x40xbf16> to vector<112x40xbf16>
    %cst_59 = arith.constant dense<0.000000e+00> : vector<64x40xf32>
    %81 = tpu.matmul %78, %80, %cst_59 {dimension_numbers = #tpu.dot_dimension_numbers<[1], [0], [0], [1], [0, 0, 1, 1], [], []>} : vector<64x112xbf16>, vector<112x40xbf16>, vector<64x40xf32> -> vector<64x40xf32>
    %82 = arith.addf %77, %81 : vector<64x40xf32>
    %83 = vector.shape_cast %73 : vector<4x16x112xbf16> to vector<64x112xbf16>
    %c2_60 = arith.constant 2 : index
    %c0_61 = arith.constant 0 : index
    %c0_62 = arith.constant 0 : index
    %84 = vector.load %arg6[%c2_60, %c0_61, %c0_62] : memref<3x112x40xbf16, #tpu.memory_space<vmem>>, vector<1x112x40xbf16>
    %85 = vector.shape_cast %84 : vector<1x112x40xbf16> to vector<112x40xbf16>
    %cst_63 = arith.constant dense<0.000000e+00> : vector<64x40xf32>
    %86 = tpu.matmul %83, %85, %cst_63 {dimension_numbers = #tpu.dot_dimension_numbers<[1], [0], [0], [1], [0, 0, 1, 1], [], []>} : vector<64x112xbf16>, vector<112x40xbf16>, vector<64x40xf32> -> vector<64x40xf32>
    %87 = arith.addf %82, %86 : vector<64x40xf32>
    %c0_64 = arith.constant 0 : index
    %c0_65 = arith.constant 0 : index
    %88 = vector.load %arg7[%c0_64, %c0_65] : memref<1x40xf32, #tpu.memory_space<vmem>>, vector<1x40xf32>
    %89 = vector.broadcast %88 : vector<1x40xf32> to vector<64x40xf32>
    %90 = arith.addf %87, %89 : vector<64x40xf32>
    %cst_66 = arith.constant 0.000000e+00 : f32
    %91 = vector.broadcast %cst_66 : f32 to vector<64x40xf32>
    %92 = arith.maximumf %90, %91 : vector<64x40xf32>
    %93 = vector.shape_cast %92 : vector<64x40xf32> to vector<4x16x40xf32>
    %cst_67 = arith.constant dense<0.000000e+00> : vector<16x40xf32>
    %94 = vector.multi_reduction <add>, %93, %cst_67 [0] : vector<4x16x40xf32> to vector<16x40xf32>
    %c0_68 = arith.constant 0 : index
    %c0_69 = arith.constant 0 : index
    %95 = vector.load %arg8[%c0_68, %c0_69] : memref<40x10xf32, #tpu.memory_space<vmem>>, vector<40x10xf32>
    %cst_70 = arith.constant dense<0.000000e+00> : vector<16x10xf32>
    %96 = tpu.matmul %94, %95, %cst_70 {dimension_numbers = #tpu.dot_dimension_numbers<[1], [0], [0], [1], [0, 0, 1, 1], [], []>} : vector<16x40xf32>, vector<40x10xf32>, vector<16x10xf32> -> vector<16x10xf32>
    %c0_71 = arith.constant 0 : index
    %c0_72 = arith.constant 0 : index
    %97 = vector.load %arg9[%c0_71, %c0_72] : memref<16x10xf32, #tpu.memory_space<vmem>>, vector<16x10xf32>
    tpu.vector_store %arg9[%c0_71, %c0_72], %96 {strides = array<i32>} : memref<16x10xf32, #tpu.memory_space<vmem>>, vector<16x10xf32>,
    return
  }
  func.func @transform_0(%arg0: i32) -> (i32, i32, i32) {
    %c0_i32 = arith.constant 0 : i32
    %c0_i32_0 = arith.constant 0 : i32
    %c0_i32_1 = arith.constant 0 : i32
    return %c0_i32, %arg0, %c0_i32_0 : i32, i32, i32
  }
  func.func @transform_1(%arg0: i32) -> (i32, i32, i32) {
    %c0_i32 = arith.constant 0 : i32
    %c0_i32_0 = arith.constant 0 : i32
    %c0_i32_1 = arith.constant 0 : i32
    %c0_i32_2 = arith.constant 0 : i32
    return %c0_i32, %c0_i32_0, %c0_i32_1 : i32, i32, i32
  }
  func.func @transform_2(%arg0: i32) -> (i32, i32) {
    %c0_i32 = arith.constant 0 : i32
    %c0_i32_0 = arith.constant 0 : i32
    %c0_i32_1 = arith.constant 0 : i32
    return %c0_i32, %c0_i32_0 : i32, i32
  }
  func.func @transform_3(%arg0: i32) -> (i32, i32, i32) {
    %c0_i32 = arith.constant 0 : i32
    %c0_i32_0 = arith.constant 0 : i32
    %c0_i32_1 = arith.constant 0 : i32
    %c0_i32_2 = arith.constant 0 : i32
    return %c0_i32, %c0_i32_0, %c0_i32_1 : i32, i32, i32
  }
  func.func @transform_4(%arg0: i32) -> (i32, i32) {
    %c0_i32 = arith.constant 0 : i32
    %c0_i32_0 = arith.constant 0 : i32
    %c0_i32_1 = arith.constant 0 : i32
    return %c0_i32, %c0_i32_0 : i32, i32
  }
  func.func @transform_5(%arg0: i32) -> (i32, i32, i32) {
    %c0_i32 = arith.constant 0 : i32
    %c0_i32_0 = arith.constant 0 : i32
    %c0_i32_1 = arith.constant 0 : i32
    %c0_i32_2 = arith.constant 0 : i32
    return %c0_i32, %c0_i32_0, %c0_i32_1 : i32, i32, i32
  }
  func.func @transform_6(%arg0: i32) -> (i32, i32) {
    %c0_i32 = arith.constant 0 : i32
    %c0_i32_0 = arith.constant 0 : i32
    %c0_i32_1 = arith.constant 0 : i32
    return %c0_i32, %c0_i32_0 : i32, i32
  }
  func.func @transform_7(%arg0: i32) -> (i32, i32) {
    %c0_i32 = arith.constant 0 : i32
    %c0_i32_0 = arith.constant 0 : i32
    %c0_i32_1 = arith.constant 0 : i32
    return %c0_i32, %c0_i32_0 : i32, i32
  }
  func.func @transform_8(%arg0: i32) -> (i32, i32) {
    %c0_i32 = arith.constant 0 : i32
    %c0_i32_0 = arith.constant 0 : i32
    return %arg0, %c0_i32 : i32, i32
  }
}

</mosaic_0001>

<bundles_post_ra>
// kernel: tile.23
= control target key start
LH: loop header
LB: loop body
LE: loop exit
PB: predicated region body
PF: predicated region fallthrough
CT: control target
= control target key end

     0   :  { %s28_s0 = inlined_call_operand.vmem [shape: f32[16], index: 0, kind: input, shape index: {}]   ;;  %s29_s1 = inlined_call_operand.vmem [shape: f32[14,16], index: 1, kind: output, shape index: {}]  }
   0x1   :  { %v4_v0 = vld [vmem:[%s28_s0] ss:$0 sm:$0xff] }
   0x2   :  { %5 = vst [vmem:[%s29_s1] sm:$0xff] %v4_v0  ;;  %8 = vst [vmem:[%s29_s1 + $0x8] sm:$0xff] %v4_v0 }

// kernel: tile.24
= control target key start
LH: loop header
LB: loop body
LE: loop exit
PB: predicated region body
PF: predicated region fallthrough
CT: control target
= control target key end

     0   :  { %s19_s8 = smov 3  ;;  %s79_s9 = smov 112   ;;  %vm4_vm0 = vcmask 130048   ;;  %vm10_vm1 = vcmask 1048448   ;;  %vm16_vm2 = vcmask 917248   ;;  %vm23_vm3 = vcmask 786048   ;;  %s126_s0 = inlined_call_operand.vmem [shape: f32[14,16], index: 0, kind: input, shape index: {}]   ;;  %s127_s1 = inlined_call_operand.vmem [shape: f32[1,224], index: 1, kind: output, shape index: {}]  }
   0x1   :  { %v64_v0 = vld [vmem:[%s126_s0 + $0x7] sm:$0x1]   ;;  %v66_v1 = vld [vmem:[%s126_s0 + $0x5] ss:$8 sm:%s19_s8]   ;;  %s80_s12 = smov 80   ;;  %s26_s15 = smov 3 }
   0x2   :  { %8 = vrot.lane.b32.xlu0 %v64_v0, %s79_s9  ;;  %21 = vrot.lane.b32.xlu1 %v66_v1, %s80_s12  ;;  %v65_v2 = vld [vmem:[%s126_s0 + $0x6] sm:$0x1]   ;;  %s33_s18 = smov 3  ;;  %s40_s19 = smov 3  ;;  %vm30_vm4 = vcmask 654848   ;;  %vm37_vm5 = vcmask 523648  }
   0x3   :  { %v67_v3 = vld [vmem:[%s126_s0 + $0x4] ss:$8 sm:%s26_s15]   ;;  %s81_s20 = smov 96   ;;  %s82_s21 = smov 64   ;;  %v68_v4 = vld [vmem:[%s126_s0 + $0x3] ss:$8 sm:%s33_s18]  }
   0x4   :  { %s2_s24 = smov 3  ;;  %v69_v5 = vld [vmem:[%s126_s0 + $0x2] ss:$8 sm:%s40_s19]   ;;  %s47_s27 = smov 3  ;;  %vm44_vm6 = vcmask 392448   ;;  %vm51_vm7 = vcmask 261248  }
   0x5   :  { %v3_v6 = vld [vmem:[%s126_s0] ss:$8 sm:%s2_s24]   ;;  %s83_s30 = smov 48   ;;  %s84_s2 = smov 32   ;;  %v70_v7 = vld [vmem:[%s126_s0 + $0x1] ss:$8 sm:%s47_s27]  }
   0x6   :  { %14 = vrot.lane.b32.xlu0 %v65_v2, %s81_s20  ;;  %28 = vrot.lane.b32.xlu1 %v67_v3, %s82_s21  ;;  %5 = vst.msk [vmem:[#allocation0] ss:$8 sm:$0x3] %vm4_vm0, %v3_v6   ;;  %s85_s0 = smov 16  }
   0xa   :  { %35 = vrot.lane.b32.xlu0 %v68_v4, %s83_s30  ;;  %42 = vrot.lane.b32.xlu1 %v69_v5, %s84_s2 }
   0xe   :  { %49 = vrot.lane.b32.xlu0 %v70_v7, %s85_s0 }
  0x74   :  { %v9_v8 = vpop.permute.xlu0 %8   ;;  %v22_v9 = vpop.permute.xlu1 %21  }
  0x75   :  { %11 = vst.msk [vmem:[#allocation0] sm:$0x1] %vm10_vm1, %v9_v8  }
  0x78   :  { %v15_v10 = vpop.permute.xlu0 %14   ;;  %v29_v11 = vpop.permute.xlu1 %28  }
  0x79   :  { %17 = vst.msk [vmem:[#allocation0] sm:$0x1] %vm16_vm2, %v15_v10  }
  0x7a   :  { %24 = vst.msk [vmem:[#allocation0] ss:$8 sm:$0x3] %vm23_vm3, %v22_v9  }
  0x7b   :  { %31 = vst.msk [vmem:[#allocation0] ss:$8 sm:$0x3] %vm30_vm4, %v29_v11  }
  0x7c   :  { %v36_v12 = vpop.permute.xlu0 %35   ;;  %v43_v13 = vpop.permute.xlu1 %42  }
  0x7d   :  { %38 = vst.msk [vmem:[#allocation0] ss:$8 sm:$0x3] %vm37_vm5, %v36_v12  }
  0x7e   :  { %45 = vst.msk [vmem:[#allocation0] ss:$8 sm:$0x3] %vm44_vm6, %v43_v13  }
  0x80   :  { %v50_v14 = vpop.permute.xlu0 %49  }
  0x81   :  { %52 = vst.msk [vmem:[#allocation0] ss:$8 sm:$0x3] %vm51_vm7, %v50_v14  }
  0x88   :  { %v56_v15 = vld [vmem:[#allocation0] sm:$0x1]  ;;  %v60_v16 = vld [vmem:[#allocation0 + $0x8] sm:$0x1] }
  0x89   :  { %58 = vst [vmem:[%s127_s1] sm:$0x1] %v56_v15  ;;  %71 = vst [vmem:[%s127_s1 + $0x1] sm:$0x1] %v60_v16 }

// kernel: tile.28
= control target key start
LH: loop header
LB: loop body
LE: loop exit
PB: predicated region body
PF: predicated region fallthrough
CT: control target
= control target key end

     0   :  { %s22_s0 = inlined_call_operand.vmem [shape: f32[16], index: 0, kind: input, shape index: {}]   ;;  %s23_s1 = inlined_call_operand.vmem [shape: f32[7,16], index: 1, kind: output, shape index: {}]  }
   0x1   :  { %v4_v0 = vld [vmem:[%s22_s0] ss:$0 sm:$0xff] }
   0x2   :  { %5 = vst [vmem:[%s23_s1] sm:$0xff] %v4_v0 }

// kernel: tile.29
= control target key start
LH: loop header
LB: loop body
LE: loop exit
PB: predicated region body
PF: predicated region fallthrough
CT: control target
= control target key end

     0   :  { %s59_s10 = smov 96   ;;  %s60_s11 = smov 64   ;;  %vm3_vm0 = vcmask 130048   ;;  %vm9_vm1 = vcmask 917248   ;;  %vm15_vm2 = vcmask 786048   ;;  %vm21_vm3 = vcmask 654848   ;;  %s99_s0 = inlined_call_operand.vmem [shape: f32[7,16], index: 0, kind: input, shape index: {}]   ;;  %s100_s1 = inlined_call_operand.vmem [shape: f32[1,112], index: 1, kind: output, shape index: {}]  }
   0x1   :  { %v47_v0 = vld [vmem:[%s99_s0 + $0x6] sm:$0x1]   ;;  %v49_v1 = vld [vmem:[%s99_s0 + $0x4] sm:$0x1]   ;;  %v48_v2 = vld [vmem:[%s99_s0 + $0x5] sm:$0x1]  }
   0x2   :  { %7 = vrot.lane.b32.xlu0 %v47_v0, %s59_s10  ;;  %19 = vrot.lane.b32.xlu1 %v49_v1, %s60_s11  ;;  %v50_v3 = vld [vmem:[%s99_s0 + $0x3] sm:$0x1]   ;;  %v2_v4 = vld [vmem:[%s99_s0] sm:$0x1]   ;;  %s61_s18 = smov 80   ;;  %s62_s19 = smov 48  }
   0x3   :  { %4 = vst.msk [vmem:[#allocation0] sm:$0x1] %vm3_vm0, %v2_v4   ;;  %v51_v5 = vld [vmem:[%s99_s0 + $0x2] sm:$0x1]   ;;  %v52_v6 = vld [vmem:[%s99_s0 + $0x1] sm:$0x1]  }
   0x4   :  { %s63_s0 = smov 32   ;;  %s64_s24 = smov 16   ;;  %vm27_vm4 = vcmask 523648   ;;  %vm33_vm5 = vcmask 392448   ;;  %vm39_vm6 = vcmask 261248  }
   0x6   :  { %13 = vrot.lane.b32.xlu0 %v48_v2, %s61_s18  ;;  %25 = vrot.lane.b32.xlu1 %v50_v3, %s62_s19 }
   0xa   :  { %31 = vrot.lane.b32.xlu0 %v51_v5, %s63_s0  ;;  %37 = vrot.lane.b32.xlu1 %v52_v6, %s64_s24 }
  0x74   :  { %v8_v7 = vpop.permute.xlu0 %7   ;;  %v20_v8 = vpop.permute.xlu1 %19  }
  0x75   :  { %10 = vst.msk [vmem:[#allocation0] sm:$0x1] %vm9_vm1, %v8_v7  }
  0x78   :  { %v14_v9 = vpop.permute.xlu0 %13   ;;  %v26_v10 = vpop.permute.xlu1 %25  }
  0x79   :  { %16 = vst.msk [vmem:[#allocation0] sm:$0x1] %vm15_vm2, %v14_v9  }
  0x7a   :  { %22 = vst.msk [vmem:[#allocation0] sm:$0x1] %vm21_vm3, %v20_v8  }
  0x7b   :  { %28 = vst.msk [vmem:[#allocation0] sm:$0x1] %vm27_vm4, %v26_v10  }
  0x7c   :  { %v32_v11 = vpop.permute.xlu0 %31   ;;  %v38_v12 = vpop.permute.xlu1 %37  }
  0x7d   :  { %34 = vst.msk [vmem:[#allocation0] sm:$0x1] %vm33_vm5, %v32_v11  }
  0x7e   :  { %40 = vst.msk [vmem:[#allocation0] sm:$0x1] %vm39_vm6, %v38_v12  }
  0x85   :  { %v44_v13 = vld [vmem:[#allocation0] sm:$0x1] }
  0x86   :  { %46 = vst [vmem:[%s100_s1] sm:$0x1] %v44_v13 }

// kernel: tile.33
= control target key start
LH: loop header
LB: loop body
LE: loop exit
PB: predicated region body
PF: predicated region fallthrough
CT: control target
= control target key end

     0   :  { %s22_s0 = inlined_call_operand.vmem [shape: f32[10], index: 0, kind: input, shape index: {}]   ;;  %s23_s1 = inlined_call_operand.vmem [shape: f32[4,10], index: 1, kind: output, shape index: {}]  }
   0x1   :  { %v4_v0 = vld [vmem:[%s22_s0] ss:$0 sm:$0xff] }
   0x2   :  { %5 = vst [vmem:[%s23_s1] sm:$0xf] %v4_v0 }

// kernel: tile.34
= control target key start
LH: loop header
LB: loop body
LE: loop exit
PB: predicated region body
PF: predicated region fallthrough
CT: control target
= control target key end

     0   :  { %vm7_vm0 = vcmask 80896   ;;  %s37_s8 = smov 10   ;;  %s38_s9 = smov 20   ;;  %vm13_vm1 = vcmask 326896   ;;  %vm19_vm2 = vcmask 244896   ;;  %vm25_vm3 = vcmask 162896   ;;  %s55_s0 = inlined_call_operand.vmem [shape: f32[4,10], index: 0, kind: input, shape index: {}]   ;;  %s56_s1 = inlined_call_operand.vmem [shape: f32[1,40], index: 1, kind: output, shape index: {}]  }
   0x1   :  { %v4_v0 = vld [vmem:[%s55_s0] sm:$0xf]  ;;  %s36_s0 = smov 30  }
   0x2   :  { %5 = vst [vmem:[#allocation1] sm:$0xf] %v4_v0 }
   0x9   :  { %v10_v1 = vld [vmem:[#allocation1 + $0x3] sm:$0x1]   ;;  %v22_v2 = vld [vmem:[#allocation1 + $0x1] sm:$0x1]   ;;  %v6_v3 = vld [vmem:[#allocation1] sm:$0x1]  }
   0xa   :  { %11 = vrot.lane.b32.xlu0 %v10_v1, %s36_s0  ;;  %23 = vrot.lane.b32.xlu1 %v22_v2, %s37_s8  ;;  %v16_v4 = vld [vmem:[#allocation1 + $0x2] sm:$0x1]   ;;  %8 = vst.msk [vmem:[#allocation0] sm:$0x1] %vm7_vm0, %v6_v3  }
   0xe   :  { %17 = vrot.lane.b32.xlu0 %v16_v4, %s38_s9 }
  0x7c   :  { %v12_v5 = vpop.permute.xlu0 %11   ;;  %v24_v6 = vpop.permute.xlu1 %23  }
  0x7d   :  { %14 = vst.msk [vmem:[#allocation0] sm:$0x1] %vm13_vm1, %v12_v5  }
  0x80   :  { %v18_v7 = vpop.permute.xlu0 %17  }
  0x81   :  { %20 = vst.msk [vmem:[#allocation0] sm:$0x1] %vm19_vm2, %v18_v7  }
  0x82   :  { %26 = vst.msk [vmem:[#allocation0] sm:$0x1] %vm25_vm3, %v24_v6  }
  0x89   :  { %v30_v8 = vld [vmem:[#allocation0] sm:$0x1] }
  0x8a   :  { %32 = vst [vmem:[%s56_s1] sm:$0x1] %v30_v8 }

// kernel: mnist_cnn_forward.1
= control target key start
LH: loop header
LB: loop body
LE: loop exit
PB: predicated region body
PF: predicated region fallthrough
CT: control target
= control target key end

     0   :  { %v3100_v1 = vmov 0   ;;  %vm228_vm0 = vcmask 1045504   ;;  %vm185_vm1 = vcmask 228352   ;;  %vm1136_vm2 = vcmask 785408   ;;  %s3841_s1 = inlined_call_operand.vmem [shape: bf16[3,28,224], index: 1, kind: input, shape index: {}]   ;;  %s3842_s0 = inlined_call_operand.vmem [shape: bf16[30,16,28], index: 0, kind: input, shape index: {}]   ;;  %s3843_s3 = inlined_call_operand.vmem [shape: bf16[3,224,112], index: 3, kind: input, shape index: {}]   ;;  %s3844_s2 = inlined_call_operand.vmem [shape: f32[1,224], index: 2, kind: input, shape index: {}]   ;;  %s3845_s5 = inlined_call_operand.vmem [shape: bf16[3,112,40], index: 5, kind: input, shape index: {}]   ;;  %s3846_s4 = inlined_call_operand.vmem [shape: f32[1,112], index: 4, kind: input, shape index: {}]   ;;  %s3847_s7 = inlined_call_operand.vmem [shape: f32[40,10], index: 7, kind: input, shape index: {}]   ;;  %s3848_s6 = inlined_call_operand.vmem [shape: f32[1,40], index: 6, kind: input, shape index: {}]   ;;  %s3849_s8 = inlined_call_operand.vmem [shape: f32[16,10], index: 8, kind: output, shape index: {}]  }
   0x1   :  { %v2989_v0 = vld [vmem:[%s3841_s1 + $0x24] ss:$8 sps:$4 sm:$0xff]   ;;  %267 = vmatprep.mubr.bf16.mxu0 %v3100_v1  ;;  %1135 = vst [vmem:[#allocation2] sm:$0xff] %v3100_v1  ;;  %1359 = vmatprep.subr.bf16.mxu1 %v3100_v1  ;;  %v2991_v2 = vld [vmem:[%s3841_s1 + $0x20] ss:$8 sps:$4 sm:$0xff]   ;;  %v2999_v11 = vld [vmem:[%s3842_s0 + $0x18] sm:$0xff]   ;;  %v985_v59 = vlaneseq }
   0x2   :  { %235 = vmatprep.subr.bf16.mxu0 %v2989_v0  ;;  %v2992_v3 = vld [vmem:[%s3841_s1 + $0x34] ss:$8 sps:$4 sm:$0x3f]   ;;  %v2994_v4 = vld [vmem:[%s3841_s1 + $0x30] ss:$8 sps:$4 sm:$0x3f]  }
   0x3   :  { %236 = vmatpush1.bf16.msra.mxu0 %v2991_v2  ;;  %v230_v5 = vsel %vm228_vm0, %v2994_v4, 0  ;;  %v2998_v6 = vld [vmem:[%s3841_s1 + $0x4] ss:$8 sps:$4 sm:$0xff]   ;;  %v2996_v8 = vld [vmem:[%s3841_s1] ss:$8 sps:$4 sm:$0xff]   ;;  %v3001_v15 = vld [vmem:[%s3842_s0 + $0x38] sm:$0xff]  }
   0x4   :  { %2477 = vmatprep.subr.msk.bf16.mxu0 %vm228_vm0, %v2992_v3  ;;  %v2995_v7 = vld [vmem:[%s3842_s0 + $0x8] sm:$0xff]   ;;  %v3006_v9 = vld [vmem:[%s3841_s1 + $0x14] ss:$8 sps:$4 sm:$0x3f]   ;;  %v3015_v26 = vld [vmem:[%s3842_s0] sm:$0xff]   ;;  %1137 = vst.msk [vmem:[#allocation2 + $0x8] sm:$0xff] %vm1136_vm2, %v3100_v1 }
   0x5   :  { %v3008_v10 = vld [vmem:[%s3841_s1 + $0x10] ss:$8 sps:$4 sm:$0x3f]   ;;  %v3000_v13 = vld [vmem:[%s3842_s0 + $0x28] sm:$0xff]   ;;  %v3274_v32 = vld [vmem:[%s3842_s0 + $0x20] sm:$0xff]   ;;  %v986_v60 = vshrl.u32 %v985_v59, 7 }
   0x6   :  { %v539_v12 = vsel %vm228_vm0, %v3008_v10, 0  ;;  %v3018_v14 = vld [vmem:[%s3841_s1 + $0x44] ss:$8 sps:$4 sm:$0xff]   ;;  %v3003_v17 = vld [vmem:[%s3842_s0 + $0x58] sm:$0xff]   ;;  %v3016_v27 = vld [vmem:[%s3841_s1 + $0x40] ss:$8 sps:$4 sm:$0xff]  }
   0x7   :  { %238 = vmatpush1.bf16.msra.mxu0 %v230_v5  ;;  %v3002_v16 = vld [vmem:[%s3842_s0 + $0x48] sm:$0xff]   ;;  %v3005_v19 = vld [vmem:[%s3842_s0 + $0x78] sm:$0xff]   ;;  %v3019_v31 = vld [vmem:[%s3842_s0 + $0x10] sm:$0xff]   ;;  %v987_v61 = vsub.s32 0, %v986_v60  ;;  %v991_v63 = vsub.s32 1, %v986_v60  ;;  %vm1903_vm3 = vcmask 916480  }
   0x8   :  { %544 = vmatprep.subr.bf16.mxu0 %v2998_v6  ;;  %v3004_v18 = vld [vmem:[%s3842_s0 + $0x68] sm:$0xff]   ;;  %v3010_v21 = vld [vmem:[%s3842_s0 + $0x98] sm:$0xff]   ;;  %v3282_v33 = vld [vmem:[%s3842_s0 + $0x30] sm:$0xff]   ;;  %vm2347_vm4 = vcmask 326656   ;;  %vm2448_vm5 = vcmask 80896  }
   0x9   :  { %v3009_v20 = vld [vmem:[%s3842_s0 + $0x88] sm:$0xff]   ;;  %v3012_v23 = vld [vmem:[%s3842_s0 + $0xb8] sm:$0xff]   ;;  %v3290_v34 = vld [vmem:[%s3842_s0 + $0x40] sm:$0xff]  }
   0xa   :  { %2478 = vmatmul.mubr.msk.bf16.vlgmr.msra.gmra.mrb[0].mxu0 %vm185_vm1, %v2995_v7  ;;  %v3011_v22 = vld [vmem:[%s3842_s0 + $0xa8] sm:$0xff]   ;;  %v3014_v25 = vld [vmem:[%s3842_s0 + $0xd8] sm:$0xff]   ;;  %v3298_v35 = vld [vmem:[%s3842_s0 + $0x50] sm:$0xff]  }
   0xb   :  { %545 = vmatpush1.bf16.msra.mxu0 %v2996_v8  ;;  %277 = vmatprep.mubr.bf16.mxu0 %v3100_v1  ;;  %v3013_v24 = vld [vmem:[%s3842_s0 + $0xc8] sm:$0xff]   ;;  %v3026_v28 = vld [vmem:[%s3841_s1 + $0x54] ss:$8 sps:$4 sm:$0x3f]   ;;  %v3024_v36 = vld [vmem:[%s3842_s0 + $0x60] sm:$0xff]  }
   0xc   :  { %2510 = vmatprep.subr.msk.bf16.mxu0 %vm228_vm0, %v3006_v9  ;;  %v3028_v29 = vld [vmem:[%s3841_s1 + $0x50] ss:$8 sps:$4 sm:$0x3f]   ;;  %v3029_v38 = vld [vmem:[%s3842_s0 + $0x80] sm:$0xff]   ;;  %v3039_v46 = vld [vmem:[%s3843_s3 + $0x88] sm:$0xff]  }
   0xd   :  { %v749_v30 = vsel %vm228_vm0, %v3028_v29, 0  ;;  %v3025_v37 = vld [vmem:[%s3842_s0 + $0x70] sm:$0xff]   ;;  %v3031_v40 = vld [vmem:[%s3842_s0 + $0xa0] sm:$0xff]   ;;  %v3037_v43 = vld [vmem:[%s3843_s3 + $0x78] sm:$0xff]  }
   0xe   :  { %v3030_v39 = vld [vmem:[%s3842_s0 + $0x90] sm:$0xff]   ;;  %v3033_v44 = vld [vmem:[%s3842_s0 + $0xc0] sm:$0xff]   ;;  %v3041_v49 = vld [vmem:[%s3843_s3 + $0x98] sm:$0xff]  }
   0xf   :  { %547 = vmatpush1.bf16.msra.mxu0 %v539_v12  ;;  %v3032_v41 = vld [vmem:[%s3842_s0 + $0xb0] sm:$0xff]   ;;  %v3038_v45 = vld [vmem:[%s3843_s3 + $0x80] sm:$0xff]   ;;  %v3043_v51 = vld [vmem:[%s3843_s3 + $0xa8] sm:$0xff]  }
  0x10   :  { %754 = vmatprep.subr.bf16.mxu0 %v3018_v14  ;;  %v3036_v42 = vld [vmem:[%s3843_s3 + $0x70] sm:$0xff]   ;;  %v3042_v50 = vld [vmem:[%s3843_s3 + $0xa0] sm:$0xff]   ;;  %v3045_v53 = vld [vmem:[%s3843_s3 + $0xb8] sm:$0xff]  }
  0x11   :  { %1360 = vmatpush1.bf16.msra.mxu1 %v3036_v42  ;;  %v3034_v47 = vld [vmem:[%s3842_s0 + $0xd0] sm:$0xff]   ;;  %v3046_v54 = vld [vmem:[%s3843_s3 + $0xc0] sm:$0xff]   ;;  %v3047_v55 = vld [vmem:[%s3843_s3 + $0xc8] sm:$0xff]  }
  0x12   :  { %2479 = vmatmul.mubr.msk.bf16.gmra.mrb[4].mxu0 %vm185_vm1, %v2999_v11  ;;  %1361 = vmatprep.subr.bf16.mxu1 %v3100_v1  ;;  %v3040_v48 = vld [vmem:[%s3843_s3 + $0x90] sm:$0xff]   ;;  %v3049_v57 = vld [vmem:[%s3843_s3 + $0xd8] sm:$0xff]   ;;  %v3035_v58 = vld [vmem:[%s3842_s0 + $0xe0] sm:$0xff]  }
  0x13   :  { %287 = vmatprep.mubr.bf16.mxu0 %v3100_v1  ;;  %v3044_v52 = vld [vmem:[%s3843_s3 + $0xb0] sm:$0xff]   ;;  %v983_v62 = vld [vmem:[%s3844_s2] sm:$0x3] }
  0x14   :  { %v3048_v56 = vld [vmem:[%s3843_s3 + $0xd0] sm:$0xff]   ;;  %v3438_v0 = vrot.slane %v983_v62, %v987_v61  ;;  %v3440_v2 = vrot.slane %v983_v62, %v991_v63 }
  0x15   :  { %1362 = vmatpush1.bf16.msra.mxu1 %v3037_v43 }
  0x16   :  { %1363 = vmatprep.subr.bf16.mxu1 %v3100_v1 }
  0x19   :  { %1364 = vmatpush1.bf16.msra.mxu1 %v3038_v45 }
  0x1a   :  { %2480 = vmatmul.mubr.msk.bf16.gmra.mrb[8].mxu0 %vm185_vm1, %v3000_v13  ;;  %1365 = vmatprep.subr.bf16.mxu1 %v3100_v1 }
  0x1b   :  { %297 = vmatprep.mubr.bf16.mxu0 %v3100_v1 }
  0x1d   :  { %1366 = vmatpush1.bf16.msra.mxu1 %v3039_v46 }
  0x1e   :  { %1367 = vmatprep.subr.bf16.mxu1 %v3100_v1 }
  0x21   :  { %1368 = vmatpush1.bf16.msra.mxu1 %v3040_v48 }
  0x22   :  { %2481 = vmatmul.mubr.msk.bf16.gmra.mrb[12].mxu0 %vm185_vm1, %v3001_v15  ;;  %1369 = vmatprep.subr.bf16.mxu1 %v3100_v1 }
  0x23   :  { %307 = vmatprep.mubr.bf16.mxu0 %v3100_v1 }
  0x25   :  { %1370 = vmatpush1.bf16.msra.mxu1 %v3041_v49  ;;  %v3052_v49 = vld [vmem:[%s3843_s3 + $0x10] sm:$0xff]  }
  0x26   :  { %1371 = vmatprep.subr.bf16.mxu1 %v3100_v1 }
  0x29   :  { %1372 = vmatpush1.bf16.msra.mxu1 %v3042_v50 }
  0x2a   :  { %2482 = vmatmul.mubr.msk.bf16.gmra.mrb[16].mxu0 %vm185_vm1, %v3002_v16  ;;  %1373 = vmatprep.subr.bf16.mxu1 %v3100_v1 }
  0x2b   :  { %317 = vmatprep.mubr.bf16.mxu0 %v3100_v1 }
  0x2d   :  { %1374 = vmatpush1.bf16.msra.mxu1 %v3043_v51 }
  0x2e   :  { %1375 = vmatprep.subr.bf16.mxu1 %v3100_v1 }
  0x31   :  { %1376 = vmatpush1.bf16.msra.mxu1 %v3044_v52 }
  0x32   :  { %2483 = vmatmul.mubr.msk.bf16.gmra.mrb[20].mxu0 %vm185_vm1, %v3003_v17  ;;  %1377 = vmatprep.subr.bf16.mxu1 %v3100_v1 }
  0x33   :  { %327 = vmatprep.mubr.bf16.mxu0 %v3100_v1 }
  0x35   :  { %1378 = vmatpush1.bf16.msra.mxu1 %v3045_v53 }
  0x36   :  { %1379 = vmatprep.subr.bf16.mxu1 %v3100_v1 }
  0x39   :  { %1380 = vmatpush1.bf16.msra.mxu1 %v3046_v54 }
  0x3a   :  { %2484 = vmatmul.mubr.msk.bf16.gmra.mrb[24].mxu0 %vm185_vm1, %v3004_v18  ;;  %1381 = vmatprep.subr.bf16.mxu1 %v3100_v1 }
  0x3b   :  { %337 = vmatprep.mubr.bf16.mxu0 %v3100_v1 }
  0x3d   :  { %1382 = vmatpush1.bf16.msra.mxu1 %v3047_v55 }
  0x3e   :  { %1383 = vmatprep.subr.bf16.mxu1 %v3100_v1 }
  0x41   :  { %1384 = vmatpush1.bf16.msra.mxu1 %v3048_v56 }
  0x42   :  { %2485 = vmatmul.mubr.msk.bf16.gmra.mrb[28].mxu0 %vm185_vm1, %v3005_v19  ;;  %1385 = vmatprep.subr.bf16.mxu1 %v3100_v1 }
  0x43   :  { %347 = vmatprep.mubr.bf16.mxu0 %v3100_v1 }
  0x45   :  { %1386 = vmatpush1.bf16.msra.mxu1 %v3049_v57  ;;  %v3053_v57 = vld [vmem:[%s3843_s3 + $0x18] sm:$0xff]  }
  0x46   :  { %1553 = vmatprep.subr.bf16.mxu1 %v3100_v1 }
  0x4a   :  { %2486 = vmatmul.mubr.msk.bf16.gmra.mrb[32].mxu0 %vm185_vm1, %v3009_v20 }
  0x4b   :  { %357 = vmatprep.mubr.bf16.mxu0 %v3100_v1 }
  0x52   :  { %2487 = vmatmul.mubr.msk.bf16.gmra.mrb[36].mxu0 %vm185_vm1, %v3010_v21 }
  0x53   :  { %367 = vmatprep.mubr.bf16.mxu0 %v3100_v1 }
  0x5a   :  { %2488 = vmatmul.mubr.msk.bf16.gmra.mrb[40].mxu0 %vm185_vm1, %v3011_v22 }
  0x5b   :  { %377 = vmatprep.mubr.bf16.mxu0 %v3100_v1 }
  0x62   :  { %2489 = vmatmul.mubr.msk.bf16.gmra.mrb[44].mxu0 %vm185_vm1, %v3012_v23 }
  0x63   :  { %387 = vmatprep.mubr.bf16.mxu0 %v3100_v1 }
  0x6a   :  { %2490 = vmatmul.mubr.msk.bf16.gmra.mrb[48].mxu0 %vm185_vm1, %v3013_v24 }
  0x6b   :  { %397 = vmatprep.mubr.bf16.mxu0 %v3100_v1 }
  0x72   :  { %2491 = vmatmul.mubr.msk.bf16.gmra.mrb[52].mxu0 %vm185_vm1, %v3014_v25 }
  0x73   :  { %576 = vmatprep.mubr.bf16.mxu0 %v3100_v1 }
  0x7a   :  { %2511 = vmatmul.mubr.msk.bf16.vlgmr.msra.gmra.mrb[0].mxu0 %vm185_vm1, %v3015_v26 }
  0x7b   :  { %755 = vmatpush1.bf16.msra.mxu0 %v3016_v27  ;;  %586 = vmatprep.mubr.bf16.mxu0 %v3100_v1 }
  0x7c   :  { %2534 = vmatprep.subr.msk.bf16.mxu0 %vm228_vm0, %v3026_v28 }
  0x7f   :  { %757 = vmatpush1.bf16.msra.mxu0 %v749_v30 }
  0x82   :  { %2512 = vmatmul.mubr.msk.bf16.gmra.mrb[4].mxu0 %vm185_vm1, %v3019_v31 }
  0x83   :  { %596 = vmatprep.mubr.bf16.mxu0 %v3100_v1 }
  0x8a   :  { %2513 = vmatmul.mubr.msk.bf16.gmra.mrb[8].mxu0 %vm185_vm1, %v3274_v32 }
  0x8b   :  { %606 = vmatprep.mubr.bf16.mxu0 %v3100_v1 }
  0x92   :  { %2514 = vmatmul.mubr.msk.bf16.gmra.mrb[12].mxu0 %vm185_vm1, %v3282_v33 }
  0x93   :  { %616 = vmatprep.mubr.bf16.mxu0 %v3100_v1 }
  0x9a   :  { %2515 = vmatmul.mubr.msk.bf16.gmra.mrb[16].mxu0 %vm185_vm1, %v3290_v34 }
  0x9b   :  { %626 = vmatprep.mubr.bf16.mxu0 %v3100_v1 }
  0xa2   :  { %2516 = vmatmul.mubr.msk.bf16.gmra.mrb[20].mxu0 %vm185_vm1, %v3298_v35 }
  0xa3   :  { %636 = vmatprep.mubr.bf16.mxu0 %v3100_v1 }
  0xaa   :  { %2517 = vmatmul.mubr.msk.bf16.gmra.mrb[24].mxu0 %vm185_vm1, %v3024_v36 }
  0xab   :  { %646 = vmatprep.mubr.bf16.mxu0 %v3100_v1 }
  0xb2   :  { %2518 = vmatmul.mubr.msk.bf16.gmra.mrb[28].mxu0 %vm185_vm1, %v3025_v37 }
  0xb3   :  { %656 = vmatprep.mubr.bf16.mxu0 %v3100_v1 }
  0xba   :  { %2519 = vmatmul.mubr.msk.bf16.gmra.mrb[32].mxu0 %vm185_vm1, %v3029_v38 }
  0xbb   :  { %666 = vmatprep.mubr.bf16.mxu0 %v3100_v1 }
  0xc2   :  { %2520 = vmatmul.mubr.msk.bf16.gmra.mrb[36].mxu0 %vm185_vm1, %v3030_v39 }
  0xc3   :  { %676 = vmatprep.mubr.bf16.mxu0 %v3100_v1 }
  0xca   :  { %2521 = vmatmul.mubr.msk.bf16.gmra.mrb[40].mxu0 %vm185_vm1, %v3031_v40 }
  0xcb   :  { %686 = vmatprep.mubr.bf16.mxu0 %v3100_v1 }
  0xd2   :  { %2522 = vmatmul.mubr.msk.bf16.gmra.mrb[44].mxu0 %vm185_vm1, %v3032_v41 }
  0xd3   :  { %696 = vmatprep.mubr.bf16.mxu0 %v3100_v1 }
  0xda   :  { %2523 = vmatmul.mubr.msk.bf16.gmra.mrb[48].mxu0 %vm185_vm1, %v3033_v44 }
  0xdb   :  { %706 = vmatprep.mubr.bf16.mxu0 %v3100_v1 }
  0xe2   :  { %2524 = vmatmul.mubr.msk.bf16.gmra.mrb[52].mxu0 %vm185_vm1, %v3034_v47 }
  0xe3   :  { %786 = vmatprep.mubr.bf16.mxu0 %v3100_v1 }
  0xea   :  { %2535 = vmatmul.mubr.msk.bf16.vlgmr.msra.gmra.mrb[0].mxu0 %vm185_vm1, %v3019_v31 }
  0xeb   :  { %796 = vmatprep.mubr.bf16.mxu0 %v3100_v1 }
  0xf2   :  { %2536 = vmatmul.mubr.msk.bf16.gmra.mrb[4].mxu0 %vm185_vm1, %v3274_v32  ;;  %v3050_v32 = vld [vmem:[%s3843_s3] sm:$0xff]  }
  0xf3   :  { %806 = vmatprep.mubr.bf16.mxu0 %v3100_v1 }
  0xfa   :  { %2537 = vmatmul.mubr.msk.bf16.gmra.mrb[8].mxu0 %vm185_vm1, %v3282_v33 }
  0xfb   :  { %816 = vmatprep.mubr.bf16.mxu0 %v3100_v1 }
 0x102   :  { %2538 = vmatmul.mubr.msk.bf16.gmra.mrb[12].mxu0 %vm185_vm1, %v3290_v34 }
 0x103   :  { %826 = vmatprep.mubr.bf16.mxu0 %v3100_v1 }
 0x10a   :  { %2539 = vmatmul.mubr.msk.bf16.gmra.mrb[16].mxu0 %vm185_vm1, %v3298_v35 }
 0x10b   :  { %836 = vmatprep.mubr.bf16.mxu0 %v3100_v1 }
 0x112   :  { %2540 = vmatmul.mubr.msk.bf16.gmra.mrb[20].mxu0 %vm185_vm1, %v3024_v36 }
 0x113   :  { %846 = vmatprep.mubr.bf16.mxu0 %v3100_v1 }
 0x11a   :  { %2541 = vmatmul.mubr.msk.bf16.gmra.mrb[24].mxu0 %vm185_vm1, %v3025_v37 }
 0x11b   :  { %856 = vmatprep.mubr.bf16.mxu0 %v3100_v1 }
 0x122   :  { %2542 = vmatmul.mubr.msk.bf16.gmra.mrb[28].mxu0 %vm185_vm1, %v3029_v38 }
 0x123   :  { %866 = vmatprep.mubr.bf16.mxu0 %v3100_v1 }
 0x12a   :  { %2543 = vmatmul.mubr.msk.bf16.gmra.mrb[32].mxu0 %vm185_vm1, %v3030_v39 }
 0x12b   :  { %876 = vmatprep.mubr.bf16.mxu0 %v3100_v1 }
 0x132   :  { %2544 = vmatmul.mubr.msk.bf16.gmra.mrb[36].mxu0 %vm185_vm1, %v3031_v40 }
 0x133   :  { %886 = vmatprep.mubr.bf16.mxu0 %v3100_v1 }
 0x13a   :  { %2545 = vmatmul.mubr.msk.bf16.gmra.mrb[40].mxu0 %vm185_vm1, %v3032_v41  ;;  %v3051_v41 = vld [vmem:[%s3843_s3 + $0x8] sm:$0xff]  }
 0x13b   :  { %896 = vmatprep.mubr.bf16.mxu0 %v3100_v1 }
 0x142   :  { %2546 = vmatmul.mubr.msk.bf16.gmra.mrb[44].mxu0 %vm185_vm1, %v3033_v44 }
 0x143   :  { %906 = vmatprep.mubr.bf16.mxu0 %v3100_v1 }
 0x14a   :  { %2547 = vmatmul.mubr.msk.bf16.gmra.mrb[48].mxu0 %vm185_vm1, %v3034_v47 }
 0x14b   :  { %916 = vmatprep.mubr.bf16.mxu0 %v3100_v1 }
 0x152   :  { %2548 = vmatmul.mubr.msk.bf16.gmra.mrb[52].mxu0 %vm185_vm1, %v3035_v58 }
 0x1bd   :  { %v788_v3 = vpop.f32.mrb[0].mxu0 }
 0x1be   :  { %v995_v4 = vadd.f32 %v3438_v0, %v788_v3  ;;  %v790_v5 = vpop.f32.mrb[1].mxu0 }
 0x1bf   :  { %v996_v6 = vadd.f32 %v3440_v2, %v790_v5  ;;  %v792_v7 = vpop.f32.mrb[2].mxu0 }
 0x1c0   :  { %v997_v8 = vadd.f32 %v3438_v0, %v792_v7  ;;  %v794_v9 = vpop.f32.mrb[3].mxu0  ;;  %v1051_v11 = vmax.f32 %v995_v4, 0.0  ;;  %v3054_v4 = vld [vmem:[%s3843_s3 + $0x20] sm:$0xff]  }
 0x1c1   :  { %v998_v10 = vadd.f32 %v3440_v2, %v794_v9  ;;  %v1052_v13 = vmax.f32 %v996_v6, 0.0 }
 0x1c2   :  { %v1053_v12 = vmax.f32 %v997_v8, 0.0 }
 0x1c3   :  { %v1054_v14 = vmax.f32 %v998_v10, 0.0 }
 0x1c4   :  { %v1107_v15 = vpack.c.bf16 %v1053_v12, %v1051_v11 }
 0x1c5   :  { %v1108_v16 = vpack.c.bf16 %v1054_v14, %v1052_v13  ;;  %v798_v17 = vpop.f32.mrb[4].mxu0  ;;  %v3055_v13 = vld [vmem:[%s3843_s3 + $0x28] sm:$0xff]  }
 0x1c6   :  { %v999_v18 = vadd.f32 %v3438_v0, %v798_v17  ;;  %v800_v19 = vpop.f32.mrb[5].mxu0 }
 0x1c7   :  { %1140 = vst.msk [vmem:[#allocation2 + $0x18] sm:$0xff] %vm1136_vm2, %v1108_v16  ;;  %v1000_v20 = vadd.f32 %v3440_v2, %v800_v19  ;;  %v802_v21 = vpop.f32.mrb[6].mxu0 }
 0x1c8   :  { %v1001_v22 = vadd.f32 %v3438_v0, %v802_v21  ;;  %v804_v23 = vpop.f32.mrb[7].mxu0  ;;  %v1055_v25 = vmax.f32 %v999_v18, 0.0  ;;  %v3056_v21 = vld [vmem:[%s3843_s3 + $0x30] sm:$0xff]  }
 0x1c9   :  { %v1002_v24 = vadd.f32 %v3440_v2, %v804_v23  ;;  %v1056_v27 = vmax.f32 %v1000_v20, 0.0 }
 0x1ca   :  { %v1057_v26 = vmax.f32 %v1001_v22, 0.0 }
 0x1cb   :  { %v1058_v28 = vmax.f32 %v1002_v24, 0.0 }
 0x1cc   :  { %v3451_v29 = vpack.c.bf16 %v1057_v26, %v1055_v25 }
 0x1cd   :  { %v1110_v30 = vpack.c.bf16 %v1058_v28, %v1056_v27  ;;  %v808_v31 = vpop.f32.mrb[8].mxu0 }
 0x1ce   :  { %v1003_v33 = vadd.f32 %v3438_v0, %v808_v31  ;;  %v810_v34 = vpop.f32.mrb[9].mxu0  ;;  %v1170_v35 = vld [vmem:[#allocation2 + $0x18] sm:$0xff] }
 0x1cf   :  { %1142 = vst.msk [vmem:[#allocation2 + $0x28] sm:$0xff] %vm1136_vm2, %v1110_v30  ;;  %v1004_v36 = vadd.f32 %v3440_v2, %v810_v34  ;;  %v812_v37 = vpop.f32.mrb[10].mxu0  ;;  %2591 = vmatprep.mubr.msk.bf16.mxu1 %vm1136_vm2, %v1170_v35  ;;  %v3057_v30 = vld [vmem:[%s3843_s3 + $0x38] sm:$0xff]  }
 0x1d0   :  { %v1005_v38 = vadd.f32 %v3438_v0, %v812_v37  ;;  %v814_v39 = vpop.f32.mrb[11].mxu0  ;;  %1392 = vmatmul.mubr.bf16.vlgmr.msra.gmra.mrb[0].mxu1 %v1107_v15  ;;  %v1059_v42 = vmax.f32 %v1003_v33, 0.0 }
 0x1d1   :  { %v1006_v40 = vadd.f32 %v3440_v2, %v814_v39  ;;  %1554 = vmatpush1.bf16.msra.mxu1 %v3050_v32  ;;  %v1060_v44 = vmax.f32 %v1004_v36, 0.0 }
 0x1d2   :  { %v1061_v43 = vmax.f32 %v1005_v38, 0.0  ;;  %1555 = vmatprep.subr.bf16.mxu1 %v3100_v1  ;;  %v3058_v38 = vld [vmem:[%s3843_s3 + $0x40] sm:$0xff]  }
 0x1d3   :  { %v1062_v45 = vmax.f32 %v1006_v40, 0.0 }
 0x1d4   :  { %v1111_v46 = vpack.c.bf16 %v1061_v43, %v1059_v42 }
 0x1d5   :  { %v1112_v47 = vpack.c.bf16 %v1062_v45, %v1060_v44  ;;  %v818_v48 = vpop.f32.mrb[12].mxu0  ;;  %1556 = vmatpush1.bf16.msra.mxu1 %v3051_v41 }
 0x1d6   :  { %v1007_v50 = vadd.f32 %v3438_v0, %v818_v48  ;;  %v820_v51 = vpop.f32.mrb[13].mxu0  ;;  %1557 = vmatprep.subr.bf16.mxu1 %v3100_v1 }
 0x1d7   :  { %1144 = vst.msk [vmem:[#allocation2 + $0x38] sm:$0xff] %vm1136_vm2, %v1112_v47  ;;  %v1008_v52 = vadd.f32 %v3440_v2, %v820_v51  ;;  %v822_v53 = vpop.f32.mrb[14].mxu0  ;;  %v3059_v47 = vld [vmem:[%s3843_s3 + $0x48] sm:$0xff]  }
 0x1d8   :  { %v1009_v54 = vadd.f32 %v3438_v0, %v822_v53  ;;  %v824_v55 = vpop.f32.mrb[15].mxu0  ;;  %v1063_v58 = vmax.f32 %v1007_v50, 0.0 }
 0x1d9   :  { %v1010_v56 = vadd.f32 %v3440_v2, %v824_v55  ;;  %1558 = vmatpush1.bf16.msra.mxu1 %v3052_v49  ;;  %v1064_v60 = vmax.f32 %v1008_v52, 0.0  ;;  %v3060_v55 = vld [vmem:[%s3843_s3 + $0x50] sm:$0xff]  }
 0x1da   :  { %v1065_v59 = vmax.f32 %v1009_v54, 0.0  ;;  %1559 = vmatprep.subr.bf16.mxu1 %v3100_v1 }
 0x1db   :  { %v1066_v61 = vmax.f32 %v1010_v56, 0.0 }
 0x1dc   :  { %v3479_v62 = vpack.c.bf16 %v1065_v59, %v1063_v58 }
 0x1dd   :  { %v1114_v63 = vpack.c.bf16 %v1066_v61, %v1064_v60  ;;  %v828_v3 = vpop.f32.mrb[16].mxu0  ;;  %1560 = vmatpush1.bf16.msra.mxu1 %v3053_v57 }
 0x1de   :  { %v1011_v5 = vadd.f32 %v3438_v0, %v828_v3  ;;  %v830_v6 = vpop.f32.mrb[17].mxu0  ;;  %v1174_v7 = vld [vmem:[#allocation2 + $0x38] sm:$0xff]  ;;  %1561 = vmatprep.subr.bf16.mxu1 %v3100_v1 }
 0x1df   :  { %1146 = vst.msk [vmem:[#allocation2 + $0x48] sm:$0xff] %vm1136_vm2, %v1114_v63  ;;  %v1012_v8 = vadd.f32 %v3440_v2, %v830_v6  ;;  %v832_v9 = vpop.f32.mrb[18].mxu0  ;;  %2592 = vmatprep.mubr.msk.bf16.mxu1 %vm1136_vm2, %v1174_v7  ;;  %v3061_v3 = vld [vmem:[%s3843_s3 + $0x58] sm:$0xff]   ;;  %v3536_v6 = vld [vmem:[#allocation2] sm:$0xff] }
 0x1e0   :  { %v1013_v10 = vadd.f32 %v3438_v0, %v832_v9  ;;  %v834_v11 = vpop.f32.mrb[19].mxu0  ;;  %1400 = vmatmul.mubr.bf16.gmra.mrb[4].mxu1 %v1111_v46  ;;  %v1067_v14 = vmax.f32 %v1011_v5, 0.0  ;;  %1904 = vst.msk [vmem:[#allocation3] sm:$0xff] %vm1903_vm3, %v3536_v6  ;;  %1906 = vst.msk [vmem:[#allocation3 + $0x40] sm:$0xff] %vm1903_vm3, %v3536_v6 }
 0x1e1   :  { %v1014_v12 = vadd.f32 %v3440_v2, %v834_v11  ;;  %1562 = vmatpush1.bf16.msra.mxu1 %v3054_v4  ;;  %v1068_v16 = vmax.f32 %v1012_v8, 0.0  ;;  %v3062_v11 = vld [vmem:[%s3843_s3 + $0x60] sm:$0xff]  }
 0x1e2   :  { %v1069_v15 = vmax.f32 %v1013_v10, 0.0  ;;  %1563 = vmatprep.subr.bf16.mxu1 %v3100_v1 }
 0x1e3   :  { %v1070_v17 = vmax.f32 %v1014_v12, 0.0 }
 0x1e4   :  { %v1115_v18 = vpack.c.bf16 %v1069_v15, %v1067_v14 }
 0x1e5   :  { %v1116_v19 = vpack.c.bf16 %v1070_v17, %v1068_v16  ;;  %v838_v20 = vpop.f32.mrb[20].mxu0  ;;  %1564 = vmatpush1.bf16.msra.mxu1 %v3055_v13 }
 0x1e6   :  { %v1015_v22 = vadd.f32 %v3438_v0, %v838_v20  ;;  %v840_v23 = vpop.f32.mrb[21].mxu0  ;;  %1565 = vmatprep.subr.bf16.mxu1 %v3100_v1  ;;  %v3063_v20 = vld [vmem:[%s3843_s3 + $0x68] sm:$0xff]  }
 0x1e7   :  { %1148 = vst.msk [vmem:[#allocation2 + $0x58] sm:$0xff] %vm1136_vm2, %v1116_v19  ;;  %v1016_v24 = vadd.f32 %v3440_v2, %v840_v23  ;;  %v842_v25 = vpop.f32.mrb[22].mxu0 }
 0x1e8   :  { %v1017_v26 = vadd.f32 %v3438_v0, %v842_v25  ;;  %v844_v27 = vpop.f32.mrb[23].mxu0  ;;  %v1071_v31 = vmax.f32 %v1015_v22, 0.0 }
 0x1e9   :  { %v1018_v28 = vadd.f32 %v3440_v2, %v844_v27  ;;  %1566 = vmatpush1.bf16.msra.mxu1 %v3056_v21  ;;  %v1072_v33 = vmax.f32 %v1016_v24, 0.0 }
 0x1ea   :  { %v1073_v32 = vmax.f32 %v1017_v26, 0.0  ;;  %1567 = vmatprep.subr.bf16.mxu1 %v3100_v1 }
 0x1eb   :  { %v1074_v34 = vmax.f32 %v1018_v28, 0.0 }
 0x1ec   :  { %v3508_v35 = vpack.c.bf16 %v1073_v32, %v1071_v31 }
 0x1ed   :  { %v1118_v36 = vpack.c.bf16 %v1074_v34, %v1072_v33  ;;  %v848_v37 = vpop.f32.mrb[24].mxu0  ;;  %1568 = vmatpush1.bf16.msra.mxu1 %v3057_v30 }
 0x1ee   :  { %v1019_v39 = vadd.f32 %v3438_v0, %v848_v37  ;;  %v850_v40 = vpop.f32.mrb[25].mxu0  ;;  %v1178_v41 = vld [vmem:[#allocation2 + $0x58] sm:$0xff]  ;;  %1569 = vmatprep.subr.bf16.mxu1 %v3100_v1 }
 0x1ef   :  { %1150 = vst.msk [vmem:[#allocation2 + $0x68] sm:$0xff] %vm1136_vm2, %v1118_v36  ;;  %v1020_v42 = vadd.f32 %v3440_v2, %v850_v40  ;;  %v852_v43 = vpop.f32.mrb[26].mxu0  ;;  %2593 = vmatprep.mubr.msk.bf16.mxu1 %vm1136_vm2, %v1178_v41 }
 0x1f0   :  { %v1021_v44 = vadd.f32 %v3438_v0, %v852_v43  ;;  %v854_v45 = vpop.f32.mrb[27].mxu0  ;;  %1408 = vmatmul.mubr.bf16.gmra.mrb[8].mxu1 %v1115_v18  ;;  %v1075_v48 = vmax.f32 %v1019_v39, 0.0 }
 0x1f1   :  { %v1022_v46 = vadd.f32 %v3440_v2, %v854_v45  ;;  %1570 = vmatpush1.bf16.msra.mxu1 %v3058_v38  ;;  %v1076_v50 = vmax.f32 %v1020_v42, 0.0 }
 0x1f2   :  { %v1077_v49 = vmax.f32 %v1021_v44, 0.0  ;;  %1571 = vmatprep.subr.bf16.mxu1 %v3100_v1 }
 0x1f3   :  { %v1078_v51 = vmax.f32 %v1022_v46, 0.0 }
 0x1f4   :  { %v1119_v52 = vpack.c.bf16 %v1077_v49, %v1075_v48 }
 0x1f5   :  { %v1120_v53 = vpack.c.bf16 %v1078_v51, %v1076_v50  ;;  %v858_v54 = vpop.f32.mrb[28].mxu0  ;;  %1572 = vmatpush1.bf16.msra.mxu1 %v3059_v47 }
 0x1f6   :  { %v1023_v56 = vadd.f32 %v3438_v0, %v858_v54  ;;  %v860_v57 = vpop.f32.mrb[29].mxu0  ;;  %1573 = vmatprep.subr.bf16.mxu1 %v3100_v1 }
 0x1f7   :  { %1152 = vst.msk [vmem:[#allocation2 + $0x78] sm:$0xff] %vm1136_vm2, %v1120_v53  ;;  %v1024_v58 = vadd.f32 %v3440_v2, %v860_v57  ;;  %v862_v59 = vpop.f32.mrb[30].mxu0 }
 0x1f8   :  { %v1025_v60 = vadd.f32 %v3438_v0, %v862_v59  ;;  %v864_v61 = vpop.f32.mrb[31].mxu0  ;;  %v1079_v4 = vmax.f32 %v1023_v56, 0.0 }
 0x1f9   :  { %v1026_v63 = vadd.f32 %v3440_v2, %v864_v61  ;;  %1574 = vmatpush1.bf16.msra.mxu1 %v3060_v55  ;;  %v1080_v1 = vmax.f32 %v1024_v58, 0.0 }
 0x1fa   :  { %v1081_v5 = vmax.f32 %v1025_v60, 0.0  ;;  %1575 = vmatprep.subr.bf16.mxu1 %v3536_v6 }
 0x1fb   :  { %v1082_v7 = vmax.f32 %v1026_v63, 0.0 }
 0x1fc   :  { %v3539_v8 = vpack.c.bf16 %v1081_v5, %v1079_v4 }
 0x1fd   :  { %v1122_v9 = vpack.c.bf16 %v1082_v7, %v1080_v1  ;;  %v868_v10 = vpop.f32.mrb[32].mxu0  ;;  %1576 = vmatpush1.bf16.msra.mxu1 %v3061_v3 }
 0x1fe   :  { %v1027_v12 = vadd.f32 %v3438_v0, %v868_v10  ;;  %v870_v13 = vpop.f32.mrb[33].mxu0  ;;  %v1182_v14 = vld [vmem:[#allocation2 + $0x78] sm:$0xff]  ;;  %1577 = vmatprep.subr.bf16.mxu1 %v3536_v6 }
 0x1ff   :  { %1154 = vst.msk [vmem:[#allocation2 + $0x88] sm:$0xff] %vm1136_vm2, %v1122_v9  ;;  %v1028_v15 = vadd.f32 %v3440_v2, %v870_v13  ;;  %v872_v16 = vpop.f32.mrb[34].mxu0  ;;  %2594 = vmatprep.mubr.msk.bf16.mxu1 %vm1136_vm2, %v1182_v14 }
 0x200   :  { %v1029_v17 = vadd.f32 %v3438_v0, %v872_v16  ;;  %v874_v18 = vpop.f32.mrb[35].mxu0  ;;  %1416 = vmatmul.mubr.bf16.gmra.mrb[12].mxu1 %v1119_v52  ;;  %v1083_v21 = vmax.f32 %v1027_v12, 0.0 }
 0x201   :  { %v1030_v19 = vadd.f32 %v3440_v2, %v874_v18  ;;  %1578 = vmatpush1.bf16.msra.mxu1 %v3062_v11  ;;  %v1084_v23 = vmax.f32 %v1028_v15, 0.0 }
 0x202   :  { %v1085_v22 = vmax.f32 %v1029_v17, 0.0  ;;  %1579 = vmatprep.subr.bf16.mxu1 %v3536_v6 }
 0x203   :  { %v1086_v24 = vmax.f32 %v1030_v19, 0.0 }
 0x204   :  { %v1123_v25 = vpack.c.bf16 %v1085_v22, %v1083_v21 }
 0x205   :  { %v1124_v26 = vpack.c.bf16 %v1086_v24, %v1084_v23  ;;  %v878_v27 = vpop.f32.mrb[36].mxu0  ;;  %1580 = vmatpush1.bf16.msra.mxu1 %v3063_v20 }
 0x206   :  { %v1031_v28 = vadd.f32 %v3438_v0, %v878_v27  ;;  %v880_v30 = vpop.f32.mrb[37].mxu0  ;;  %1758 = vmatprep.subr.bf16.mxu1 %v3536_v6 }
 0x207   :  { %1156 = vst.msk [vmem:[#allocation2 + $0x98] sm:$0xff] %vm1136_vm2, %v1124_v26  ;;  %v1032_v31 = vadd.f32 %v3440_v2, %v880_v30  ;;  %v882_v32 = vpop.f32.mrb[38].mxu0 }
 0x208   :  { %v1033_v33 = vadd.f32 %v3438_v0, %v882_v32  ;;  %v884_v34 = vpop.f32.mrb[39].mxu0  ;;  %v1087_v37 = vmax.f32 %v1031_v28, 0.0 }
 0x209   :  { %v1034_v36 = vadd.f32 %v3440_v2, %v884_v34  ;;  %v1088_v39 = vmax.f32 %v1032_v31, 0.0 }
 0x20a   :  { %v1089_v38 = vmax.f32 %v1033_v33, 0.0 }
 0x20b   :  { %v1090_v40 = vmax.f32 %v1034_v36, 0.0 }
 0x20c   :  { %v3561_v41 = vpack.c.bf16 %v1089_v38, %v1087_v37 }
 0x20d   :  { %v1126_v42 = vpack.c.bf16 %v1090_v40, %v1088_v39  ;;  %v888_v43 = vpop.f32.mrb[40].mxu0 }
 0x20e   :  { %v1035_v44 = vadd.f32 %v3438_v0, %v888_v43  ;;  %v890_v45 = vpop.f32.mrb[41].mxu0  ;;  %v1186_v46 = vld [vmem:[#allocation2 + $0x98] sm:$0xff] }
 0x20f   :  { %1158 = vst.msk [vmem:[#allocation2 + $0xa8] sm:$0xff] %vm1136_vm2, %v1126_v42  ;;  %v1036_v47 = vadd.f32 %v3440_v2, %v890_v45  ;;  %v892_v48 = vpop.f32.mrb[42].mxu0  ;;  %2595 = vmatprep.mubr.msk.bf16.mxu1 %vm1136_vm2, %v1186_v46  ;;  %v1168_v46 = vld [vmem:[#allocation2 + $0x8] sm:$0xff] }
 0x210   :  { %v1037_v49 = vadd.f32 %v3438_v0, %v892_v48  ;;  %v894_v50 = vpop.f32.mrb[43].mxu0  ;;  %1424 = vmatmul.mubr.bf16.gmra.mrb[16].mxu1 %v1123_v25  ;;  %v1091_v52 = vmax.f32 %v1035_v44, 0.0  ;;  %v3066_v48 = vld [vmem:[%s3843_s3 + $0xf0] sm:$0xff]  }
 0x211   :  { %v1038_v51 = vadd.f32 %v3440_v2, %v894_v50  ;;  %v1092_v54 = vmax.f32 %v1036_v47, 0.0  ;;  %v3065_v47 = vld [vmem:[%s3843_s3 + $0xe8] sm:$0xff]   ;;  %v3067_v50 = vld [vmem:[%s3843_s3 + $0xf8] sm:$0xff]  }
 0x212   :  { %v1093_v53 = vmax.f32 %v1037_v49, 0.0  ;;  %v1176_v49 = vld [vmem:[#allocation2 + $0x48] sm:$0xff] }
 0x213   :  { %v1094_v55 = vmax.f32 %v1038_v51, 0.0  ;;  %v3068_v51 = vld [vmem:[%s3843_s3 + $0x100] sm:$0xff]  }
 0x214   :  { %v1127_v56 = vpack.c.bf16 %v1093_v53, %v1091_v52  ;;  %v1180_v52 = vld [vmem:[#allocation2 + $0x68] sm:$0xff] }
 0x215   :  { %v1128_v57 = vpack.c.bf16 %v1094_v55, %v1092_v54  ;;  %v898_v58 = vpop.f32.mrb[44].mxu0  ;;  %v3069_v53 = vld [vmem:[%s3843_s3 + $0x108] sm:$0xff]   ;;  %v3070_v54 = vld [vmem:[%s3843_s3 + $0x110] sm:$0xff]  }
 0x216   :  { %v1039_v59 = vadd.f32 %v3438_v0, %v898_v58  ;;  %v900_v60 = vpop.f32.mrb[45].mxu0  ;;  %v1184_v55 = vld [vmem:[#allocation2 + $0x88] sm:$0xff] }
 0x217   :  { %1160 = vst.msk [vmem:[#allocation2 + $0xb8] sm:$0xff] %vm1136_vm2, %v1128_v57  ;;  %v1040_v61 = vadd.f32 %v3440_v2, %v900_v60  ;;  %v902_v63 = vpop.f32.mrb[46].mxu0  ;;  %v3072_v57 = vld [vmem:[%s3843_s3 + $0x120] sm:$0xff]   ;;  %v1188_v58 = vld [vmem:[#allocation2 + $0xa8] sm:$0xff]  ;;  %v3074_v60 = vld [vmem:[%s3843_s3 + $0x130] sm:$0xff]  }
 0x218   :  { %v1041_v3 = vadd.f32 %v3438_v0, %v902_v63  ;;  %v904_v4 = vpop.f32.mrb[47].mxu0  ;;  %v1095_v1 = vmax.f32 %v1039_v59, 0.0  ;;  %v3073_v59 = vld [vmem:[%s3843_s3 + $0x128] sm:$0xff]   ;;  %v3075_v63 = vld [vmem:[%s3843_s3 + $0x138] sm:$0xff]  }
 0x219   :  { %v1042_v5 = vadd.f32 %v3440_v2, %v904_v4  ;;  %v1096_v9 = vmax.f32 %v1040_v61, 0.0  ;;  %v3077_v4 = vld [vmem:[%s3843_s3 + $0x148] sm:$0xff]  }
 0x21a   :  { %v1097_v7 = vmax.f32 %v1041_v3, 0.0  ;;  %v3076_v3 = vld [vmem:[%s3843_s3 + $0x140] sm:$0xff]  }
 0x21b   :  { %v1098_v10 = vmax.f32 %v1042_v5, 0.0 }
 0x21c   :  { %v3574_v11 = vpack.c.bf16 %v1097_v7, %v1095_v1 }
 0x21d   :  { %v1130_v12 = vpack.c.bf16 %v1098_v10, %v1096_v9  ;;  %v908_v13 = vpop.f32.mrb[48].mxu0 }
 0x21e   :  { %v1043_v14 = vadd.f32 %v3438_v0, %v908_v13  ;;  %v910_v15 = vpop.f32.mrb[49].mxu0  ;;  %v1190_v16 = vld [vmem:[#allocation2 + $0xb8] sm:$0xff] }
 0x21f   :  { %1162 = vst.msk [vmem:[#allocation2 + $0xc8] sm:$0xff] %vm1136_vm2, %v1130_v12  ;;  %v1044_v17 = vadd.f32 %v3440_v2, %v910_v15  ;;  %v912_v18 = vpop.f32.mrb[50].mxu0  ;;  %2596 = vmatprep.mubr.msk.bf16.mxu1 %vm1136_vm2, %v1190_v16  ;;  %v3080_v16 = vld [vmem:[%s3845_s5 + $0x48] sm:$0xff]  }
 0x220   :  { %v1045_v19 = vadd.f32 %v3438_v0, %v912_v18  ;;  %v914_v20 = vpop.f32.mrb[51].mxu0  ;;  %1432 = vmatmul.mubr.bf16.gmra.mrb[20].mxu1 %v1127_v56  ;;  %v1099_v22 = vmax.f32 %v1043_v14, 0.0  ;;  %v3071_v56 = vld [vmem:[%s3843_s3 + $0x118] sm:$0xff]  }
 0x221   :  { %v1046_v21 = vadd.f32 %v3440_v2, %v914_v20  ;;  %v1100_v24 = vmax.f32 %v1044_v17, 0.0 }
 0x222   :  { %v1101_v23 = vmax.f32 %v1045_v19, 0.0  ;;  %v3081_v19 = vld [vmem:[%s3845_s5 + $0x50] sm:$0xff]  }
 0x223   :  { %v1102_v25 = vmax.f32 %v1046_v21, 0.0 }
 0x224   :  { %v1131_v26 = vpack.c.bf16 %v1101_v23, %v1099_v22  ;;  %v3083_v22 = vld [vmem:[%s3845_s5 + $0x60] sm:$0xff]   ;;  %v3084_v23 = vld [vmem:[%s3845_s5 + $0x68] sm:$0xff]  }
 0x225   :  { %v1132_v27 = vpack.c.bf16 %v1102_v25, %v1100_v24  ;;  %v918_v28 = vpop.f32.mrb[52].mxu0 }
 0x226   :  { %v1047_v30 = vadd.f32 %v3438_v0, %v918_v28  ;;  %v920_v31 = vpop.f32.mrb[53].mxu0  ;;  %v1192_v61 = vld [vmem:[#allocation2 + $0xc8] sm:$0xff]  ;;  %v3702_v28 = vld [vmem:[%s3845_s5] sm:$0xff]  }
 0x227   :  { %1164 = vst.msk [vmem:[#allocation2 + $0xd8] sm:$0xff] %vm1136_vm2, %v1132_v27  ;;  %v1048_v32 = vadd.f32 %v3440_v2, %v920_v31  ;;  %v922_v33 = vpop.f32.mrb[54].mxu0 }
 0x228   :  { %v1049_v34 = vadd.f32 %v3438_v0, %v922_v33  ;;  %v924_v36 = vpop.f32.mrb[55].mxu0  ;;  %v1103_v38 = vmax.f32 %v1047_v30, 0.0  ;;  %v3064_v0 = vld [vmem:[%s3843_s3 + $0xe0] sm:$0xff]  }
 0x229   :  { %v1050_v37 = vadd.f32 %v3440_v2, %v924_v36  ;;  %v1104_v40 = vmax.f32 %v1048_v32, 0.0  ;;  %v1172_v2 = vld [vmem:[#allocation2 + $0x28] sm:$0xff] }
 0x22a   :  { %v1105_v39 = vmax.f32 %v1049_v34, 0.0 }
 0x22b   :  { %v1106_v42 = vmax.f32 %v1050_v37, 0.0 }
 0x22c   :  { %v3587_v43 = vpack.c.bf16 %v1105_v39, %v1103_v38 }
 0x22d   :  { %v1134_v44 = vpack.c.bf16 %v1106_v42, %v1104_v40 }
 0x22e   :  { %v1194_v45 = vld [vmem:[#allocation2 + $0xd8] sm:$0xff] }
 0x22f   :  { %1166 = vst.msk [vmem:[#allocation2 + $0xe8] sm:$0xff] %vm1136_vm2, %v1134_v44  ;;  %2597 = vmatprep.mubr.msk.bf16.mxu1 %vm1136_vm2, %v1194_v45 }
 0x230   :  { %1440 = vmatmul.mubr.bf16.gmra.mrb[24].mxu1 %v1131_v26 }
 0x231   :  { %2612 = vmatprep.mubr.msk.bf16.mxu1 %vm1136_vm2, %v1168_v46 }
 0x238   :  { %1586 = vmatmul.mubr.bf16.vlgmr.msra.gmra.mrb[28].mxu1 %v3536_v6 }
 0x239   :  { %2613 = vmatprep.mubr.msk.bf16.mxu1 %vm1136_vm2, %v1172_v2  ;;  %1759 = vmatpush1.bf16.msra.mxu1 %v3064_v0 }
 0x23a   :  { %1760 = vmatprep.subr.bf16.mxu1 %v3536_v6 }
 0x23d   :  { %1761 = vmatpush1.bf16.msra.mxu1 %v3065_v47 }
 0x23e   :  { %1762 = vmatprep.subr.bf16.mxu1 %v3536_v6 }
 0x240   :  { %1594 = vmatmul.mubr.bf16.gmra.mrb[32].mxu1 %v3451_v29 }
 0x241   :  { %2614 = vmatprep.mubr.msk.bf16.mxu1 %vm1136_vm2, %v1176_v49  ;;  %1763 = vmatpush1.bf16.msra.mxu1 %v3066_v48 }
 0x242   :  { %1764 = vmatprep.subr.bf16.mxu1 %v3536_v6 }
 0x245   :  { %1765 = vmatpush1.bf16.msra.mxu1 %v3067_v50 }
 0x246   :  { %1766 = vmatprep.subr.bf16.mxu1 %v3536_v6 }
 0x248   :  { %1602 = vmatmul.mubr.bf16.gmra.mrb[36].mxu1 %v3479_v62 }
 0x249   :  { %2615 = vmatprep.mubr.msk.bf16.mxu1 %vm1136_vm2, %v1180_v52  ;;  %1767 = vmatpush1.bf16.msra.mxu1 %v3068_v51 }
 0x24a   :  { %1768 = vmatprep.subr.bf16.mxu1 %v3536_v6 }
 0x24d   :  { %1769 = vmatpush1.bf16.msra.mxu1 %v3069_v53 }
 0x24e   :  { %1770 = vmatprep.subr.bf16.mxu1 %v3536_v6 }
 0x250   :  { %1610 = vmatmul.mubr.bf16.gmra.mrb[40].mxu1 %v3508_v35 }
 0x251   :  { %2616 = vmatprep.mubr.msk.bf16.mxu1 %vm1136_vm2, %v1184_v55  ;;  %1771 = vmatpush1.bf16.msra.mxu1 %v3070_v54 }
 0x252   :  { %1772 = vmatprep.subr.bf16.mxu1 %v3536_v6 }
 0x255   :  { %1773 = vmatpush1.bf16.msra.mxu1 %v3071_v56 }
 0x256   :  { %1774 = vmatprep.subr.bf16.mxu1 %v3536_v6 }
 0x258   :  { %1618 = vmatmul.mubr.bf16.gmra.mrb[44].mxu1 %v3539_v8 }
 0x259   :  { %2617 = vmatprep.mubr.msk.bf16.mxu1 %vm1136_vm2, %v1188_v58  ;;  %1775 = vmatpush1.bf16.msra.mxu1 %v3072_v57 }
 0x25a   :  { %1776 = vmatprep.subr.bf16.mxu1 %v3536_v6 }
 0x25d   :  { %1777 = vmatpush1.bf16.msra.mxu1 %v3073_v59 }
 0x25e   :  { %1778 = vmatprep.subr.bf16.mxu1 %v3536_v6 }
 0x260   :  { %1626 = vmatmul.mubr.bf16.gmra.mrb[48].mxu1 %v3561_v41 }
 0x261   :  { %2618 = vmatprep.mubr.msk.bf16.mxu1 %vm1136_vm2, %v1192_v61  ;;  %1779 = vmatpush1.bf16.msra.mxu1 %v3074_v60 }
 0x262   :  { %1780 = vmatprep.subr.bf16.mxu1 %v3536_v6 }
 0x265   :  { %1781 = vmatpush1.bf16.msra.mxu1 %v3075_v63 }
 0x266   :  { %1782 = vmatprep.subr.bf16.mxu1 %v3536_v6 }
 0x268   :  { %1634 = vmatmul.mubr.bf16.gmra.mrb[52].mxu1 %v3574_v11 }
 0x269   :  { %1783 = vmatpush1.bf16.msra.mxu1 %v3076_v3  ;;  %2661 = vmatprep.mubr.msk.bf16.mxu1 %vm1136_vm2, %v1172_v2 }
 0x26a   :  { %1784 = vmatprep.subr.bf16.mxu1 %v3536_v6  ;;  %v3082_v6 = vld [vmem:[%s3845_s5 + $0x58] sm:$0xff]  }
 0x26d   :  { %1785 = vmatpush1.bf16.msra.mxu1 %v3077_v4 }
 0x270   :  { %1791 = vmatmul.mubr.bf16.vlgmr.msra.gmra.mrb[56].mxu1 %v3451_v29  ;;  %v1196_v29 = vld [vmem:[#allocation2 + $0xe8] sm:$0xff] }
 0x271   :  { %2662 = vmatprep.mubr.msk.bf16.mxu1 %vm1136_vm2, %v1176_v49 }
 0x278   :  { %1799 = vmatmul.mubr.bf16.gmra.mrb[60].mxu1 %v3479_v62 }
 0x279   :  { %2663 = vmatprep.mubr.msk.bf16.mxu1 %vm1136_vm2, %v1180_v52 }
 0x280   :  { %1807 = vmatmul.mubr.bf16.gmra.mrb[64].mxu1 %v3508_v35 }
 0x281   :  { %2664 = vmatprep.mubr.msk.bf16.mxu1 %vm1136_vm2, %v1184_v55 }
 0x288   :  { %1815 = vmatmul.mubr.bf16.gmra.mrb[68].mxu1 %v3539_v8 }
 0x289   :  { %2665 = vmatprep.mubr.msk.bf16.mxu1 %vm1136_vm2, %v1188_v58 }
 0x290   :  { %1823 = vmatmul.mubr.bf16.gmra.mrb[72].mxu1 %v3561_v41  ;;  %v3078_v41 = vld [vmem:[%s3845_s5 + $0x38] sm:$0xff]  }
 0x291   :  { %2666 = vmatprep.mubr.msk.bf16.mxu1 %vm1136_vm2, %v1192_v61  ;;  %2773 = vmatprep.subr.bf16.mxu1 %v3078_v41 }
 0x292   :  { %2774 = vmatpush3.bf16.msra.mxu1 %v3078_v41 }
 0x298   :  { %1831 = vmatmul.mubr.bf16.gmra.mrb[76].mxu1 %v3574_v11  ;;  %v3079_v11 = vld [vmem:[%s3845_s5 + $0x40] sm:$0xff]  }
 0x299   :  { %2667 = vmatprep.mubr.msk.bf16.mxu1 %vm1136_vm2, %v1196_v29  ;;  %2775 = vmatprep.subr.bf16.mxu1 %v3079_v11 }
 0x29a   :  { %2776 = vmatpush3.bf16.msra.mxu1 %v3079_v11 }
 0x29b   :  { %2777 = vmatprep.subr.bf16.mxu1 %v3080_v16 }
 0x29e   :  { %2778 = vmatpush3.bf16.msra.mxu1 %v3080_v16 }
 0x29f   :  { %2779 = vmatprep.subr.bf16.mxu1 %v3081_v19 }
 0x2a0   :  { %1839 = vmatmul.mubr.bf16.gmra.mrb[80].mxu1 %v3587_v43 }
 0x2a2   :  { %2780 = vmatpush3.bf16.msra.mxu1 %v3081_v19 }
 0x2a3   :  { %v1393_v62 = vpop.f32.mrb[0].mxu1  ;;  %2781 = vmatprep.subr.bf16.mxu1 %v3082_v6 }
 0x2a4   :  { %v1395_v5 = vpop.f32.mrb[1].mxu1 }
 0x2a5   :  { %v1396_v35 = vpop.f32.mrb[2].mxu1 }
 0x2a6   :  { %v1398_v1 = vpop.f32.mrb[3].mxu1  ;;  %2782 = vmatpush3.bf16.msra.mxu1 %v3082_v6 }
 0x2a7   :  { %2783 = vmatprep.subr.bf16.mxu1 %v3083_v22 }
 0x2aa   :  { %2784 = vmatpush3.bf16.msra.mxu1 %v3083_v22 }
 0x2ab   :  { %2785 = vmatprep.subr.bf16.mxu1 %v3084_v23 }
 0x2ae   :  { %2786 = vmatpush3.bf16.msra.mxu1 %v3084_v23 }
 0x2af   :  { %2795 = vmatprep.subr.bf16.mxu1 %v3702_v28 }
 0x2b3   :  { %v1401_v7 = vpop.f32.mrb[4].mxu1 }
 0x2b4   :  { %v1403_v9 = vpop.f32.mrb[5].mxu1 }
 0x2b5   :  { %v1404_v8 = vpop.f32.mrb[6].mxu1 }
 0x2b6   :  { %v1406_v10 = vpop.f32.mrb[7].mxu1 }
 0x2c3   :  { %v1409_v12 = vpop.f32.mrb[8].mxu1 }
 0x2c4   :  { %v1411_v13 = vpop.f32.mrb[9].mxu1 }
 0x2c5   :  { %v1412_v14 = vpop.f32.mrb[10].mxu1 }
 0x2c6   :  { %v1414_v15 = vpop.f32.mrb[11].mxu1 }
 0x2d3   :  { %v1417_v17 = vpop.f32.mrb[12].mxu1 }
 0x2d4   :  { %v1419_v18 = vpop.f32.mrb[13].mxu1 }
 0x2d5   :  { %v1420_v20 = vpop.f32.mrb[14].mxu1 }
 0x2d6   :  { %v1422_v21 = vpop.f32.mrb[15].mxu1 }
 0x2e3   :  { %v1425_v24 = vpop.f32.mrb[16].mxu1 }
 0x2e4   :  { %v1427_v25 = vpop.f32.mrb[17].mxu1 }
 0x2e5   :  { %v1428_v26 = vpop.f32.mrb[18].mxu1 }
 0x2e6   :  { %v1430_v27 = vpop.f32.mrb[19].mxu1 }
 0x2f3   :  { %v1433_v30 = vpop.f32.mrb[20].mxu1 }
 0x2f4   :  { %v1435_v31 = vpop.f32.mrb[21].mxu1 }
 0x2f5   :  { %v1436_v32 = vpop.f32.mrb[22].mxu1 }
 0x2f6   :  { %v1438_v33 = vpop.f32.mrb[23].mxu1 }
 0x303   :  { %v1441_v34 = vpop.f32.mrb[24].mxu1 }
 0x304   :  { %v1443_v36 = vpop.f32.mrb[25].mxu1 }
 0x305   :  { %v1444_v37 = vpop.f32.mrb[26].mxu1 }
 0x306   :  { %v1446_v38 = vpop.f32.mrb[27].mxu1 }
 0x30b   :  { %v1587_v39 = vpop.f32.mrb[28].mxu1 }
 0x30c   :  { %v1588_v40 = vadd.f32 %v1587_v39, %v1393_v62  ;;  %v1589_v42 = vpop.f32.mrb[29].mxu1 }
 0x30d   :  { %v1590_v43 = vpop.f32.mrb[30].mxu1 }
 0x30e   :  { %v1591_v44 = vadd.f32 %v1590_v43, %v1396_v35  ;;  %v1592_v45 = vpop.f32.mrb[31].mxu1 }
 0x313   :  { %v1595_v46 = vpop.f32.mrb[32].mxu1 }
 0x314   :  { %v1596_v0 = vadd.f32 %v1595_v46, %v1401_v7  ;;  %v1597_v2 = vpop.f32.mrb[33].mxu1 }
 0x315   :  { %v1598_v47 = vpop.f32.mrb[34].mxu1 }
 0x316   :  { %v1599_v48 = vadd.f32 %v1598_v47, %v1404_v8  ;;  %v1600_v49 = vpop.f32.mrb[35].mxu1 }
 0x31b   :  { %v1603_v50 = vpop.f32.mrb[36].mxu1 }
 0x31c   :  { %v1604_v51 = vadd.f32 %v1603_v50, %v1409_v12  ;;  %v1605_v52 = vpop.f32.mrb[37].mxu1 }
 0x31d   :  { %v1606_v53 = vpop.f32.mrb[38].mxu1 }
 0x31e   :  { %v1607_v54 = vadd.f32 %v1606_v53, %v1412_v14  ;;  %v1608_v55 = vpop.f32.mrb[39].mxu1 }
 0x323   :  { %v1611_v56 = vpop.f32.mrb[40].mxu1 }
 0x324   :  { %v3705_v57 = vadd.f32 %v1611_v56, %v1417_v17  ;;  %v1613_v58 = vpop.f32.mrb[41].mxu1  ;;  %v3724_v17 = vld [vmem:[%s3846_s4] ss:$0 sm:$0xff] }
 0x325   :  { %v1614_v59 = vpop.f32.mrb[42].mxu1 }
 0x326   :  { %v3707_v60 = vadd.f32 %v1614_v59, %v1420_v20  ;;  %v1616_v61 = vpop.f32.mrb[43].mxu1 }
 0x32b   :  { %v1619_v63 = vpop.f32.mrb[44].mxu1 }
 0x32c   :  { %v3709_v3 = vadd.f32 %v1619_v63, %v1425_v24  ;;  %v1621_v4 = vpop.f32.mrb[45].mxu1 }
 0x32d   :  { %v1622_v29 = vpop.f32.mrb[46].mxu1 }
 0x32e   :  { %v3711_v62 = vadd.f32 %v1622_v29, %v1428_v26  ;;  %v1624_v5 = vpop.f32.mrb[47].mxu1 }
 0x333   :  { %v1627_v35 = vpop.f32.mrb[48].mxu1 }
 0x334   :  { %v3713_v1 = vadd.f32 %v1627_v35, %v1433_v30  ;;  %v1629_v7 = vpop.f32.mrb[49].mxu1 }
 0x335   :  { %v1630_v9 = vpop.f32.mrb[50].mxu1 }
 0x336   :  { %v3715_v8 = vadd.f32 %v1630_v9, %v1436_v32  ;;  %v1632_v10 = vpop.f32.mrb[51].mxu1 }
 0x33b   :  { %v1635_v41 = vpop.f32.mrb[52].mxu1 }
 0x33c   :  { %v3717_v11 = vadd.f32 %v1635_v41, %v1441_v34  ;;  %v1637_v12 = vpop.f32.mrb[53].mxu1 }
 0x33d   :  { %v1638_v13 = vpop.f32.mrb[54].mxu1 }
 0x33e   :  { %v3719_v14 = vadd.f32 %v1638_v13, %v1444_v37  ;;  %v1640_v15 = vpop.f32.mrb[55].mxu1  ;;  %v3087_v13 = vld [vmem:[%s3845_s5 + $0x10] sm:$0xff]  }
 0x343   :  { %v1792_v16 = vpop.f32.mrb[56].mxu1 }
 0x344   :  { %v1847_v18 = vadd.f32 %v1792_v16, %v1588_v40  ;;  %v1794_v19 = vpop.f32.mrb[57].mxu1 }
 0x345   :  { %v1795_v20 = vpop.f32.mrb[58].mxu1 }
 0x346   :  { %v1868_v21 = vadd.f32 %v3724_v17, %v1847_v18  ;;  %v1848_v6 = vadd.f32 %v1795_v20, %v1591_v44  ;;  %v1797_v22 = vpop.f32.mrb[59].mxu1 }
 0x348   :  { %v1869_v23 = vadd.f32 %v3724_v17, %v1848_v6  ;;  %v1882_v24 = vmax.f32 %v1868_v21, 0.0 }
 0x34a   :  { %v1883_v25 = vmax.f32 %v1869_v23, 0.0 }
 0x34b   :  { %v1800_v26 = vpop.f32.mrb[60].mxu1 }
 0x34c   :  { %v1896_v27 = vpack.c.bf16 %v1883_v25, %v1882_v24  ;;  %v1849_v30 = vadd.f32 %v1800_v26, %v1596_v0  ;;  %v1802_v31 = vpop.f32.mrb[61].mxu1 }
 0x34d   :  { %v1803_v32 = vpop.f32.mrb[62].mxu1 }
 0x34e   :  { %1908 = vst.msk [vmem:[#allocation3 + $0x8] sm:$0xff] %vm1903_vm3, %v1896_v27  ;;  %v1870_v33 = vadd.f32 %v3724_v17, %v1849_v30  ;;  %v1850_v34 = vadd.f32 %v1803_v32, %v1599_v48  ;;  %v1805_v36 = vpop.f32.mrb[63].mxu1 }
 0x350   :  { %v1871_v37 = vadd.f32 %v3724_v17, %v1850_v34  ;;  %v1884_v38 = vmax.f32 %v1870_v33, 0.0 }
 0x352   :  { %v1885_v39 = vmax.f32 %v1871_v37, 0.0 }
 0x353   :  { %v1808_v40 = vpop.f32.mrb[64].mxu1 }
 0x354   :  { %v1897_v42 = vpack.c.bf16 %v1885_v39, %v1884_v38  ;;  %v1851_v43 = vadd.f32 %v1808_v40, %v1604_v51  ;;  %v1810_v44 = vpop.f32.mrb[65].mxu1  ;;  %v3091_v39 = vld [vmem:[%s3845_s5 + $0x30] sm:$0xff]  }
 0x355   :  { %v1811_v45 = vpop.f32.mrb[66].mxu1  ;;  %v1916_v46 = vld [vmem:[#allocation3 + $0x8] sm:$0xff]  ;;  %v1915_v44 = vld [vmem:[#allocation3] sm:$0xff] }
 0x356   :  { %1909 = vst.msk [vmem:[#allocation3 + $0x10] sm:$0xff] %vm1903_vm3, %v1897_v42  ;;  %v1872_v0 = vadd.f32 %v3724_v17, %v1851_v43  ;;  %v1852_v2 = vadd.f32 %v1811_v45, %v1607_v54  ;;  %v1813_v47 = vpop.f32.mrb[67].mxu1  ;;  %2787 = vmatprep.mubr.msk.bf16.mxu1 %vm1903_vm3, %v1916_v46  ;;  %v3093_v45 = vld [vmem:[%s3845_s5 + $0x78] sm:$0xff]  }
 0x357   :  { %v3095_v47 = vld [vmem:[%s3845_s5 + $0x88] sm:$0xff]  }
 0x358   :  { %v1873_v48 = vadd.f32 %v3724_v17, %v1852_v2  ;;  %v1886_v49 = vmax.f32 %v1872_v0, 0.0  ;;  %v3094_v2 = vld [vmem:[%s3845_s5 + $0x80] sm:$0xff]  }
 0x35a   :  { %v1887_v50 = vmax.f32 %v1873_v48, 0.0 }
 0x35b   :  { %v1816_v52 = vpop.f32.mrb[68].mxu1 }
 0x35c   :  { %v1898_v53 = vpack.c.bf16 %v1887_v50, %v1886_v49  ;;  %v1853_v55 = vadd.f32 %v1816_v52, %v3705_v57  ;;  %v1818_v51 = vpop.f32.mrb[69].mxu1  ;;  %v3086_v57 = vld [vmem:[%s3845_s5 + $0x8] sm:$0xff]   ;;  %v3096_v49 = vld [vmem:[%s3845_s5 + $0x90] sm:$0xff]   ;;  %v3097_v50 = vld [vmem:[%s3845_s5 + $0x98] sm:$0xff]  }
 0x35d   :  { %v1819_v56 = vpop.f32.mrb[70].mxu1  ;;  %v1917_v46 = vld [vmem:[#allocation3 + $0x10] sm:$0xff]  ;;  %v3098_v52 = vld [vmem:[%s3845_s5 + $0xa0] sm:$0xff]   ;;  %v2363_v51 = vld [vmem:[%s3847_s7 + $0x8] sm:$0xff] }
 0x35e   :  { %1910 = vst.msk [vmem:[#allocation3 + $0x18] sm:$0xff] %vm1903_vm3, %v1898_v53  ;;  %v1874_v58 = vadd.f32 %v3724_v17, %v1853_v55  ;;  %v1854_v59 = vadd.f32 %v1819_v56, %v3707_v60  ;;  %v1821_v54 = vpop.f32.mrb[71].mxu1  ;;  %v1923_v53 = vld [vmem:[#allocation3 + $0x40] sm:$0xff] }
 0x35f   :  { %v2362_v55 = vld [vmem:[%s3847_s7] sm:$0xff] }
 0x360   :  { %v1875_v61 = vadd.f32 %v3724_v17, %v1854_v59  ;;  %v1888_v63 = vmax.f32 %v1874_v58, 0.0  ;;  %v2852_v56 = vpack.c.bf16 %v2363_v51, %v2362_v55  ;;  %v2364_v58 = vld [vmem:[%s3847_s7 + $0x10] sm:$0xff]  ;;  %v2365_v59 = vld [vmem:[%s3847_s7 + $0x18] sm:$0xff] }
 0x361   :  { %v2856_v54 = vpack.c.bf16 %v2365_v59, %v2364_v58 }
 0x362   :  { %v1889_v4 = vmax.f32 %v1875_v61, 0.0  ;;  %v2366_v61 = vld [vmem:[%s3847_s7 + $0x20] sm:$0xff] }
 0x363   :  { %v1824_v29 = vpop.f32.mrb[72].mxu1 }
 0x364   :  { %v1899_v5 = vpack.c.bf16 %v1889_v4, %v1888_v63  ;;  %v1855_v35 = vadd.f32 %v1824_v29, %v3709_v3  ;;  %v1826_v7 = vpop.f32.mrb[73].mxu1  ;;  %v2730_v63 = vld [vmem:[%s3848_s6] ss:$0 sm:$0xff] }
 0x365   :  { %v1827_v9 = vpop.f32.mrb[74].mxu1  ;;  %v1918_v10 = vld [vmem:[#allocation3 + $0x18] sm:$0xff] }
 0x366   :  { %1911 = vst.msk [vmem:[#allocation3 + $0x20] sm:$0xff] %vm1903_vm3, %v1899_v5  ;;  %v1876_v60 = vadd.f32 %v3724_v17, %v1855_v35  ;;  %v1856_v41 = vadd.f32 %v1827_v9, %v3711_v62  ;;  %v1829_v12 = vpop.f32.mrb[75].mxu1  ;;  %2788 = vmatmul.mubr.msk.bf16.vlgmr.msra.gmra.mrb[84].mxu1 %vm1903_vm3, %v1918_v10 }
 0x367   :  { %2796 = vmatpush3.bf16.msra.mxu1 %v3702_v28  ;;  %v3088_v28 = vld [vmem:[%s3845_s5 + $0x18] sm:$0xff]  }
 0x368   :  { %v1877_v3 = vadd.f32 %v3724_v17, %v1856_v41  ;;  %2797 = vmatprep.subr.bf16.mxu1 %v3086_v57  ;;  %v1890_v15 = vmax.f32 %v1876_v60, 0.0 }
 0x36a   :  { %v1891_v16 = vmax.f32 %v1877_v3, 0.0 }
 0x36b   :  { %v1832_v18 = vpop.f32.mrb[76].mxu1  ;;  %2798 = vmatpush3.bf16.msra.mxu1 %v3086_v57 }
 0x36c   :  { %v1900_v19 = vpack.c.bf16 %v1891_v16, %v1890_v15  ;;  %v1857_v20 = vadd.f32 %v1832_v18, %v3713_v1  ;;  %v1834_v62 = vpop.f32.mrb[77].mxu1  ;;  %2799 = vmatprep.subr.bf16.mxu1 %v3087_v13  ;;  %v3089_v1 = vld [vmem:[%s3845_s5 + $0x20] sm:$0xff]  }
 0x36d   :  { %v1835_v21 = vpop.f32.mrb[78].mxu1  ;;  %v1919_v0 = vld [vmem:[#allocation3 + $0x20] sm:$0xff] }
 0x36e   :  { %1912 = vst.msk [vmem:[#allocation3 + $0x28] sm:$0xff] %vm1903_vm3, %v1900_v19  ;;  %v1878_v6 = vadd.f32 %v3724_v17, %v1857_v20  ;;  %v1858_v22 = vadd.f32 %v1835_v21, %v3715_v8  ;;  %v1837_v23 = vpop.f32.mrb[79].mxu1  ;;  %v3090_v8 = vld [vmem:[%s3845_s5 + $0x28] sm:$0xff]  }
 0x36f   :  { %2800 = vmatpush3.bf16.msra.mxu1 %v3087_v13 }
 0x370   :  { %v1879_v24 = vadd.f32 %v3724_v17, %v1858_v22  ;;  %2801 = vmatprep.subr.bf16.mxu1 %v3088_v28  ;;  %v1892_v25 = vmax.f32 %v1878_v6, 0.0 }
 0x372   :  { %v1893_v26 = vmax.f32 %v1879_v24, 0.0 }
 0x373   :  { %v1840_v27 = vpop.f32.mrb[80].mxu1  ;;  %2802 = vmatpush3.bf16.msra.mxu1 %v3088_v28 }
 0x374   :  { %v1901_v30 = vpack.c.bf16 %v1893_v26, %v1892_v25  ;;  %v1859_v31 = vadd.f32 %v1840_v27, %v3717_v11  ;;  %v1842_v32 = vpop.f32.mrb[81].mxu1  ;;  %2803 = vmatprep.subr.bf16.mxu1 %v3089_v1 }
 0x375   :  { %v1843_v33 = vpop.f32.mrb[82].mxu1  ;;  %v1920_v34 = vld [vmem:[#allocation3 + $0x28] sm:$0xff] }
 0x376   :  { %1913 = vst.msk [vmem:[#allocation3 + $0x30] sm:$0xff] %vm1903_vm3, %v1901_v30  ;;  %v1880_v36 = vadd.f32 %v3724_v17, %v1859_v31  ;;  %v1860_v37 = vadd.f32 %v1843_v33, %v3719_v14  ;;  %v1845_v38 = vpop.f32.mrb[83].mxu1  ;;  %2791 = vmatprep.mubr.msk.bf16.mxu1 %vm1903_vm3, %v1920_v34  ;;  %v3092_v14 = vld [vmem:[%s3845_s5 + $0x70] sm:$0xff]  }
 0x377   :  { %2804 = vmatpush3.bf16.msra.mxu1 %v3089_v1 }
 0x378   :  { %v1881_v11 = vadd.f32 %v3724_v17, %v1860_v37  ;;  %2805 = vmatprep.subr.bf16.mxu1 %v3090_v8  ;;  %v1894_v40 = vmax.f32 %v1880_v36, 0.0 }
 0x37a   :  { %v1895_v42 = vmax.f32 %v1881_v11, 0.0 }
 0x37b   :  { %2806 = vmatpush3.bf16.msra.mxu1 %v3090_v8 }
 0x37c   :  { %v1902_v43 = vpack.c.bf16 %v1895_v42, %v1894_v40  ;;  %2807 = vmatprep.subr.bf16.mxu1 %v3091_v39 }
 0x37d   :  { %v1921_v48 = vld [vmem:[#allocation3 + $0x30] sm:$0xff] }
 0x37e   :  { %1914 = vst.msk [vmem:[#allocation3 + $0x38] sm:$0xff] %vm1903_vm3, %v1902_v43 }
 0x37f   :  { %2808 = vmatpush3.bf16.msra.mxu1 %v3091_v39 }
 0x380   :  { %2817 = vmatprep.subr.bf16.mxu1 %v3092_v14 }
 0x385   :  { %v1922_v17 = vld [vmem:[#allocation3 + $0x38] sm:$0xff] }
 0x386   :  { %2792 = vmatmul.mubr.msk.bf16.gmra.mrb[88].mxu1 %vm1903_vm3, %v1922_v17 }
 0x387   :  { %2809 = vmatprep.mubr.msk.bf16.mxu1 %vm1903_vm3, %v1915_v44 }
 0x38e   :  { %2810 = vmatmul.mubr.msk.bf16.vlgmr.msra.gmra.mrb[84].mxu1 %vm1903_vm3, %v1917_v46 }
 0x38f   :  { %2818 = vmatpush3.bf16.msra.mxu1 %v3092_v14  ;;  %2813 = vmatprep.mubr.msk.bf16.mxu1 %vm1903_vm3, %v1919_v0 }
 0x390   :  { %2819 = vmatprep.subr.bf16.mxu1 %v3093_v45 }
 0x393   :  { %2820 = vmatpush3.bf16.msra.mxu1 %v3093_v45 }
 0x394   :  { %2821 = vmatprep.subr.bf16.mxu1 %v3094_v2 }
 0x396   :  { %2814 = vmatmul.mubr.msk.bf16.gmra.mrb[88].mxu1 %vm1903_vm3, %v1921_v48 }
 0x397   :  { %2822 = vmatpush3.bf16.msra.mxu1 %v3094_v2  ;;  %2831 = vmatprep.mubr.msk.bf16.mxu1 %vm1903_vm3, %v1917_v46 }
 0x398   :  { %2823 = vmatprep.subr.bf16.mxu1 %v3095_v47 }
 0x39b   :  { %2824 = vmatpush3.bf16.msra.mxu1 %v3095_v47 }
 0x39c   :  { %2825 = vmatprep.subr.bf16.mxu1 %v3096_v49 }
 0x39f   :  { %2826 = vmatpush3.bf16.msra.mxu1 %v3096_v49 }
 0x3a0   :  { %2827 = vmatprep.subr.bf16.mxu1 %v3097_v50 }
 0x3a3   :  { %2828 = vmatpush3.bf16.msra.mxu1 %v3097_v50 }
 0x3a4   :  { %2829 = vmatprep.subr.bf16.mxu1 %v3098_v52 }
 0x3a7   :  { %2830 = vmatpush3.bf16.msra.mxu1 %v3098_v52 }
 0x3a8   :  { %2853 = vmatprep.subr.bf16.mxu1 %v2852_v56 }
 0x3aa   :  { %2832 = vmatmul.mubr.msk.bf16.vlgmr.msra.gmra.mrb[84].mxu1 %vm1903_vm3, %v1919_v0 }
 0x3ab   :  { %2835 = vmatprep.mubr.msk.bf16.mxu1 %vm1903_vm3, %v1921_v48  ;;  %2855 = vmatpush3.bf16.msra.mxu1 %v2852_v56 }
 0x3ac   :  { %2857 = vmatprep.subr.bf16.mxu1 %v2856_v54 }
 0x3af   :  { %2859 = vmatpush3.bf16.msra.mxu1 %v2856_v54 }
 0x3b0   :  { %2847 = vmatprep.subr.mxu1 %v2366_v61 }
 0x3b2   :  { %2836 = vmatmul.mubr.msk.bf16.gmra.mrb[88].mxu1 %vm1903_vm3, %v1923_v53 }
 0x3b3   :  { %2848 = vmatpush3.msra.mxu1 %v2366_v61 }
 0x47d   :  { %v2833_v4 = vpop.f32.mrb[84].mxu1 }
 0x47e   :  { %v2333_v29 = vadd.f32 %v2833_v4, %v2730_v63  ;;  %v2285_v5 = vpop.f32.mrb[85].mxu1 }
 0x47f   :  { %v2331_v35 = vadd.f32 %v2730_v63, %v2285_v5  ;;  %v2834_v7 = vpop.f32.mrb[86].mxu1 }
 0x480   :  { %v2341_v57 = vmax.f32 %v2333_v29, 0.0  ;;  %v2334_v9 = vadd.f32 %v2834_v7, %v2730_v63  ;;  %v2288_v10 = vpop.f32.mrb[87].mxu1 }
 0x481   :  { %v2339_v60 = vmax.f32 %v2331_v35, 0.0  ;;  %v2332_v41 = vadd.f32 %v2730_v63, %v2288_v10 }
 0x482   :  { %v2349_v12 = vsel %vm2347_vm4, %v2341_v57, 0.0  ;;  %v2342_v3 = vmax.f32 %v2334_v9, 0.0 }
 0x483   :  { %v2348_v13 = vsel %vm2347_vm4, %v2339_v60, 0.0  ;;  %v2340_v15 = vmax.f32 %v2332_v41, 0.0 }
 0x484   :  { %v2350_v16 = vadd.f32 %v2349_v12, %v2348_v13  ;;  %v2356_v18 = vsel %vm2347_vm4, %v2342_v3, 0.0 }
 0x485   :  { %v2355_v19 = vsel %vm2347_vm4, %v2340_v15, 0.0  ;;  %v2837_v20 = vpop.f32.mrb[88].mxu1 }
 0x486   :  { %v2357_v62 = vadd.f32 %v2356_v18, %v2355_v19  ;;  %v2337_v28 = vadd.f32 %v2837_v20, %v2730_v63  ;;  %v2301_v21 = vpop.f32.mrb[89].mxu1 }
 0x487   :  { %v2335_v6 = vadd.f32 %v2730_v63, %v2301_v21  ;;  %v2838_v22 = vpop.f32.mrb[90].mxu1 }
 0x488   :  { %v2338_v23 = vadd.f32 %v2838_v22, %v2730_v63  ;;  %v2304_v24 = vpop.f32.mrb[91].mxu1  ;;  %v2345_v1 = vmax.f32 %v2337_v28, 0.0 }
 0x489   :  { %v2343_v25 = vmax.f32 %v2335_v6, 0.0  ;;  %v2336_v26 = vadd.f32 %v2730_v63, %v2304_v24 }
 0x48a   :  { %v2346_v30 = vmax.f32 %v2338_v23, 0.0  ;;  %v2353_v8 = vsel %vm2347_vm4, %v2345_v1, 0.0 }
 0x48b   :  { %v2351_v27 = vsel %vm2347_vm4, %v2343_v25, 0.0  ;;  %v2344_v31 = vmax.f32 %v2336_v26, 0.0 }
 0x48c   :  { %v2352_v32 = vadd.f32 %v2351_v27, %v2350_v16  ;;  %v2360_v37 = vsel %vm2347_vm4, %v2346_v30, 0.0 }
 0x48d   :  { %v2358_v33 = vsel %vm2347_vm4, %v2344_v31, 0.0 }
 0x48e   :  { %v2354_v34 = vadd.f32 %v2353_v8, %v2352_v32  ;;  %v2359_v36 = vadd.f32 %v2358_v33, %v2357_v62 }
 0x490   :  { %v2361_v38 = vadd.f32 %v2360_v37, %v2359_v36  ;;  %2849 = vmatprep.mubr.msk.f32.mxu1 %vm2347_vm4, %v2354_v34 }
 0x492   :  { %2850 = vmatmul.mubr.msk.f32.vlgmr.msra.gmra.mrb[92].mxu1 %vm2347_vm4, %v2361_v38 }
 0x565   :  { %v2851_v11 = vpop.f32.mrb[92].mxu1 }
 0x566   :  { %2450 = vst.msk [vmem:[%s3849_s8 + $0x8] sm:$0xff] %vm2448_vm5, %v2851_v11  ;;  %v2439_v39 = vpop.f32.mrb[93].mxu1 }
 0x567   :  { %2449 = vst.msk [vmem:[%s3849_s8] sm:$0xff] %vm2448_vm5, %v2439_v39 }

</bundles_post_ra>
